<compile_context>
chip_gen: v7x
topology: tpu7x:2x2x1
jax: 0.10.0
libtpu: 0.0.40
codegen_flags: <defaults>
</compile_context>

<pallas_src>
import jax
import jax.numpy as jnp
from jax.experimental import pallas as pl
from jax.experimental.pallas import tpu as pltpu

STATES = 3
ACTIONS = 1
H1 = 64      # width of fc_s / fc_a
H2 = 32      # width of fc_cat

_SELU_ALPHA = 1.6732632423543772
_SELU_SCALE = 1.0507009873554805


def _selu(x):
    # SELU: scale * (x if x > 0 else alpha * (exp(x) - 1))
    return _SELU_SCALE * jnp.where(x > 0, x, _SELU_ALPHA * (jnp.exp(x) - 1.0))


def sacq_kernel(xt_ref, at_ref, wsT_ref, bs_ref, waT_ref, ba_ref,
                wc1T_ref, wc2T_ref, bc_ref, woT_ref, bo_ref, out_ref):
    # Batch is on the lane axis: every load, every intermediate and the final
    # store are lane-dense.  Biases broadcast along lanes on the VPU.
    h1 = _selu(jnp.dot(wsT_ref[...], xt_ref[...],
                       preferred_element_type=jnp.float32) + bs_ref[...])   # (64, TB)
    h2 = _selu(jnp.dot(waT_ref[...], at_ref[...],
                       preferred_element_type=jnp.float32) + ba_ref[...])   # (64, TB)

    # fc_cat over the virtual concat [h1; h2]: split-K matmul pair, so the
    # 128-row concat never materializes.
    q = _selu(jnp.dot(wc1T_ref[...], h1, preferred_element_type=jnp.float32)
              + jnp.dot(wc2T_ref[...], h2, preferred_element_type=jnp.float32)
              + bc_ref[...])                                                 # (32, TB)

    # fc_out: (ACTIONS, 32) @ (32, TB) -> lane-dense (ACTIONS, TB) output.
    out = jnp.dot(woT_ref[...], q, preferred_element_type=jnp.float32) + bo_ref[...]
    out_ref[...] = out.astype(out_ref.dtype)
    # NOTE: the K=3 / K=1 first-layer matmuls waste MXU contraction width, but
    # this kernel is HBM/overhead bound; only move them to VPU multiply-adds
    # if a bundle dump ever shows the vector-extended (MXU push) slot binding.


def _round_up(x, m):
    return ((x + m - 1) // m) * m


def _choose_batch_tiling(B):
    """Return (B_pad, TB, grid): lane-axis batch tiling."""
    b128 = _round_up(B, 128)          # batch is the lane axis -> 128 multiple
    tb = min(8192, b128)              # large tiles amortize per-step overhead
    if b128 >= 256:
        # Keep at least 2 grid steps so ("parallel",) shards across both
        # v7x TensorCores (harmless single-TC elsewhere).
        tb = min(tb, max(128, _round_up(b128 // 2, 128)))
    grid = pl.cdiv(b128, tb)
    return grid * tb, tb, grid


def pack_params(params):
    """Transpose per-layer params into the feature-major kernel layout."""
    (w_s, b_s, w_a, b_a, w_cat, b_cat, w_out, b_out) = params
    return (w_s.T,                        # (64, STATES)
            b_s.reshape(H1, 1),
            w_a.T,                        # (64, ACTIONS)
            b_a.reshape(H1, 1),
            w_cat[:H1, :].T,              # (32, 64)   fc_cat, K-split part 1
            w_cat[H1:, :].T,              # (32, 64)   fc_cat, K-split part 2
            b_cat.reshape(H2, 1),
            w_out.T,                      # (ACTIONS, 32)
            b_out.reshape(ACTIONS, 1))


def sacq_forward_t(xt, at, params):
    """Transposed entry point: xt (STATES, B), at (ACTIONS, B) -> (ACTIONS, B)."""
    B = xt.shape[1]
    B_pad, TB, grid = _choose_batch_tiling(B)
    if B_pad != B:
        xt = jnp.pad(xt, ((0, 0), (0, B_pad - B)))
        at = jnp.pad(at, ((0, 0), (0, B_pad - B)))

    packed = pack_params(params)

    batch_spec = lambda rows: pl.BlockSpec((rows, TB), lambda i: (0, i))
    const_spec = lambda shape: pl.BlockSpec(shape, lambda i: (0, 0))

    out = pl.pallas_call(
        sacq_kernel,
        out_shape=jax.ShapeDtypeStruct((ACTIONS, B_pad), jnp.float32),
        grid=(grid,),
        in_specs=[
            batch_spec(STATES),              # x^T, tiled over batch lanes
            batch_spec(ACTIONS),             # a^T, tiled over batch lanes
            const_spec((H1, STATES)),        # W_s^T      (VMEM-resident)
            const_spec((H1, 1)),             # b_s
            const_spec((H1, ACTIONS)),       # W_a^T
            const_spec((H1, 1)),             # b_a
            const_spec((H2, H1)),            # W_cat[:64]^T
            const_spec((H2, H1)),            # W_cat[64:]^T
            const_spec((H2, 1)),             # b_cat
            const_spec((ACTIONS, H2)),       # W_out^T
            const_spec((ACTIONS, 1)),        # b_out
        ],
        out_specs=batch_spec(ACTIONS),       # lane-dense (ACTIONS, TB) stores
        compiler_params=pltpu.CompilerParams(
            dimension_semantics=("parallel",)),
    )(xt, at, *packed)
    return out[:, :B]


def sacq_forward(x, a, params):
    """PyTorch-layout entry: x (B, STATES), a (B, ACTIONS) -> (B, ACTIONS)."""
    B = x.shape[0]
    qt = sacq_forward_t(x.T, a.T, params)          # (ACTIONS, B)
    if ACTIONS == 1:
        return qt.reshape(B, ACTIONS)              # same linear layout: free
    return qt.T


def init_params(key):
    """Deterministic init; weights stored as (in_features, out_features)."""
    ks = jax.random.split(key, 8)

    def lin(kw, kb, fan_in, fan_out):
        # Mimic PyTorch Linear default init: U(-1/sqrt(fan_in), 1/sqrt(fan_in))
        bound = 1.0 / jnp.sqrt(jnp.float32(fan_in))
        w = jax.random.uniform(kw, (fan_in, fan_out), jnp.float32, -bound, bound)
        b = jax.random.uniform(kb, (fan_out,), jnp.float32, -bound, bound)
        return w, b

    w_s, b_s = lin(ks[0], ks[1], STATES, H1)
    w_a, b_a = lin(ks[2], ks[3], ACTIONS, H1)
    w_c, b_c = lin(ks[4], ks[5], 2 * H1, H2)
    w_o, b_o = lin(ks[6], ks[7], H2, ACTIONS)
    return (w_s, b_s, w_a, b_a, w_c, b_c, w_o, b_o)


def reference_forward(x, a, params):
    (w_s, b_s, w_a, b_a, w_c, b_c, w_o, b_o) = params
    h1 = _selu(x @ w_s + b_s)
    h2 = _selu(a @ w_a + b_a)
    cat = jnp.concatenate([h1, h2], axis=1)
    q = _selu(cat @ w_c + b_c)
    return q @ w_o + b_o


if __name__ == "__main__":
    key = jax.random.PRNGKey(0)
    kp, kx, ka = jax.random.split(key, 3)

    params = init_params(kp)

    B = 1024   # small, but exercises a 2-step batch grid (TB = 512)
    # Produce the data directly in the transposed (feature-major) layout so no
    # wrapper-side concat/transpose touches HBM before the kernel reads it.
    xt = jax.random.normal(kx, (STATES, B), jnp.float32)
    at = jax.random.normal(ka, (ACTIONS, B), jnp.float32)

    qt = sacq_forward_t(xt, at, params)
    qt = jax.block_until_ready(qt)

    q_ref = reference_forward(xt.T, at.T, params)              # (B, ACTIONS)
    assert qt.shape == (ACTIONS, B)
    q_kernel = qt.reshape(B, ACTIONS) if ACTIONS == 1 else qt.T
    assert jnp.allclose(q_kernel, q_ref, atol=1e-4, rtol=1e-4), \
        "mismatch vs JAX reference (transposed entry)"

    # Also exercise the PyTorch-layout wrapper once.
    q2 = jax.block_until_ready(sacq_forward(xt.T, at.T, params))
    assert q2.shape == (B, ACTIONS)
    assert jnp.allclose(q2, q_ref, atol=1e-4, rtol=1e-4), \
        "mismatch vs JAX reference (standard entry)"

    print("KERNEL_OK")
</pallas_src>

<mosaic_0001>
module attributes {stable_mosaic.version = 11 : i64} {
  func.func @sacq_kernel(%arg0: i32, %arg1: memref<3x512xf32, #tpu.memory_space<vmem>>, %arg2: memref<1x512xf32, #tpu.memory_space<vmem>>, %arg3: memref<64x3xf32, #tpu.memory_space<vmem>>, %arg4: memref<64x1xf32, #tpu.memory_space<vmem>>, %arg5: memref<64x1xf32, #tpu.memory_space<vmem>>, %arg6: memref<64x1xf32, #tpu.memory_space<vmem>>, %arg7: memref<32x64xf32, #tpu.memory_space<vmem>>, %arg8: memref<32x64xf32, #tpu.memory_space<vmem>>, %arg9: memref<32x1xf32, #tpu.memory_space<vmem>>, %arg10: memref<1x32xf32, #tpu.memory_space<vmem>>, %arg11: memref<1x1xf32, #tpu.memory_space<vmem>>, %arg12: memref<1x512xf32, #tpu.memory_space<vmem>>) attributes {dimension_semantics = [#tpu.dimension_semantics<parallel>], iteration_bounds = array<i64: 2>, scalar_prefetch = 0 : i64, scratch_operands = 0 : i64, tpu.core_type = #tpu.core_type<tc>, window_params = [{transform_indices = @transform_0, window_bounds = array<i64: 3, 512>}, {transform_indices = @transform_1, window_bounds = array<i64: 1, 512>}, {pipeline_mode = #tpu.pipeline_mode<synchronous>, transform_indices = @transform_2, window_bounds = array<i64: 64, 3>}, {pipeline_mode = #tpu.pipeline_mode<synchronous>, transform_indices = @transform_3, window_bounds = array<i64: 64, 1>}, {pipeline_mode = #tpu.pipeline_mode<synchronous>, transform_indices = @transform_4, window_bounds = array<i64: 64, 1>}, {pipeline_mode = #tpu.pipeline_mode<synchronous>, transform_indices = @transform_5, window_bounds = array<i64: 64, 1>}, {pipeline_mode = #tpu.pipeline_mode<synchronous>, transform_indices = @transform_6, window_bounds = array<i64: 32, 64>}, {pipeline_mode = #tpu.pipeline_mode<synchronous>, transform_indices = @transform_7, window_bounds = array<i64: 32, 64>}, {pipeline_mode = #tpu.pipeline_mode<synchronous>, transform_indices = @transform_8, window_bounds = array<i64: 32, 1>}, {pipeline_mode = #tpu.pipeline_mode<synchronous>, transform_indices = @transform_9, window_bounds = array<i64: 1, 32>}, {pipeline_mode = #tpu.pipeline_mode<synchronous>, transform_indices = @transform_10, window_bounds = array<i64: 1, 1>}, {transform_indices = @transform_11, window_bounds = array<i64: 1, 512>}]} {
    %c0 = arith.constant 0 : index
    %c0_0 = arith.constant 0 : index
    %0 = vector.load %arg3[%c0, %c0_0] : memref<64x3xf32, #tpu.memory_space<vmem>>, vector<64x3xf32>
    %c0_1 = arith.constant 0 : index
    %c0_2 = arith.constant 0 : index
    %1 = vector.load %arg1[%c0_1, %c0_2] : memref<3x512xf32, #tpu.memory_space<vmem>>, vector<3x512xf32>
    %cst = arith.constant dense<0.000000e+00> : vector<64x512xf32>
    %2 = tpu.matmul %0, %1, %cst {dimension_numbers = #tpu.dot_dimension_numbers<[1], [0], [0], [1], [0, 0, 1, 1], [], []>} : vector<64x3xf32>, vector<3x512xf32>, vector<64x512xf32> -> vector<64x512xf32>
    %c0_3 = arith.constant 0 : index
    %c0_4 = arith.constant 0 : index
    %3 = vector.load %arg4[%c0_3, %c0_4] : memref<64x1xf32, #tpu.memory_space<vmem>>, vector<64x1xf32>
    %4 = vector.broadcast %3 : vector<64x1xf32> to vector<64x512xf32>
    %5 = arith.addf %2, %4 : vector<64x512xf32>
    %cst_5 = arith.constant 0.000000e+00 : f32
    %6 = vector.broadcast %cst_5 : f32 to vector<64x512xf32>
    %7 = arith.cmpf ogt, %5, %6 : vector<64x512xf32>
    %8 = math.exp %5 : vector<64x512xf32>
    %cst_6 = arith.constant 1.000000e+00 : f32
    %9 = vector.broadcast %cst_6 : f32 to vector<64x512xf32>
    %10 = arith.subf %8, %9 : vector<64x512xf32>
    %cst_7 = arith.constant 1.67326319 : f32
    %11 = vector.broadcast %cst_7 : f32 to vector<64x512xf32>
    %12 = arith.mulf %11, %10 : vector<64x512xf32>
    %13 = arith.select %7, %5, %12 : vector<64x512xi1>, vector<64x512xf32>
    %cst_8 = arith.constant 1.05070102 : f32
    %14 = vector.broadcast %cst_8 : f32 to vector<64x512xf32>
    %15 = arith.mulf %14, %13 : vector<64x512xf32>
    %c0_9 = arith.constant 0 : index
    %c0_10 = arith.constant 0 : index
    %16 = vector.load %arg5[%c0_9, %c0_10] : memref<64x1xf32, #tpu.memory_space<vmem>>, vector<64x1xf32>
    %c0_11 = arith.constant 0 : index
    %c0_12 = arith.constant 0 : index
    %17 = vector.load %arg2[%c0_11, %c0_12] : memref<1x512xf32, #tpu.memory_space<vmem>>, vector<1x512xf32>
    %cst_13 = arith.constant dense<0.000000e+00> : vector<64x512xf32>
    %18 = tpu.matmul %16, %17, %cst_13 {dimension_numbers = #tpu.dot_dimension_numbers<[1], [0], [0], [1], [0, 0, 1, 1], [], []>} : vector<64x1xf32>, vector<1x512xf32>, vector<64x512xf32> -> vector<64x512xf32>
    %c0_14 = arith.constant 0 : index
    %c0_15 = arith.constant 0 : index
    %19 = vector.load %arg6[%c0_14, %c0_15] : memref<64x1xf32, #tpu.memory_space<vmem>>, vector<64x1xf32>
    %20 = vector.broadcast %19 : vector<64x1xf32> to vector<64x512xf32>
    %21 = arith.addf %18, %20 : vector<64x512xf32>
    %cst_16 = arith.constant 0.000000e+00 : f32
    %22 = vector.broadcast %cst_16 : f32 to vector<64x512xf32>
    %23 = arith.cmpf ogt, %21, %22 : vector<64x512xf32>
    %24 = math.exp %21 : vector<64x512xf32>
    %cst_17 = arith.constant 1.000000e+00 : f32
    %25 = vector.broadcast %cst_17 : f32 to vector<64x512xf32>
    %26 = arith.subf %24, %25 : vector<64x512xf32>
    %cst_18 = arith.constant 1.67326319 : f32
    %27 = vector.broadcast %cst_18 : f32 to vector<64x512xf32>
    %28 = arith.mulf %27, %26 : vector<64x512xf32>
    %29 = arith.select %23, %21, %28 : vector<64x512xi1>, vector<64x512xf32>
    %cst_19 = arith.constant 1.05070102 : f32
    %30 = vector.broadcast %cst_19 : f32 to vector<64x512xf32>
    %31 = arith.mulf %30, %29 : vector<64x512xf32>
    %c0_20 = arith.constant 0 : index
    %c0_21 = arith.constant 0 : index
    %32 = vector.load %arg7[%c0_20, %c0_21] : memref<32x64xf32, #tpu.memory_space<vmem>>, vector<32x64xf32>
    %cst_22 = arith.constant dense<0.000000e+00> : vector<32x512xf32>
    %33 = tpu.matmul %32, %15, %cst_22 {dimension_numbers = #tpu.dot_dimension_numbers<[1], [0], [0], [1], [0, 0, 1, 1], [], []>} : vector<32x64xf32>, vector<64x512xf32>, vector<32x512xf32> -> vector<32x512xf32>
    %c0_23 = arith.constant 0 : index
    %c0_24 = arith.constant 0 : index
    %34 = vector.load %arg8[%c0_23, %c0_24] : memref<32x64xf32, #tpu.memory_space<vmem>>, vector<32x64xf32>
    %cst_25 = arith.constant dense<0.000000e+00> : vector<32x512xf32>
    %35 = tpu.matmul %34, %31, %cst_25 {dimension_numbers = #tpu.dot_dimension_numbers<[1], [0], [0], [1], [0, 0, 1, 1], [], []>} : vector<32x64xf32>, vector<64x512xf32>, vector<32x512xf32> -> vector<32x512xf32>
    %36 = arith.addf %33, %35 : vector<32x512xf32>
    %c0_26 = arith.constant 0 : index
    %c0_27 = arith.constant 0 : index
    %37 = vector.load %arg9[%c0_26, %c0_27] : memref<32x1xf32, #tpu.memory_space<vmem>>, vector<32x1xf32>
    %38 = vector.broadcast %37 : vector<32x1xf32> to vector<32x512xf32>
    %39 = arith.addf %36, %38 : vector<32x512xf32>
    %cst_28 = arith.constant 0.000000e+00 : f32
    %40 = vector.broadcast %cst_28 : f32 to vector<32x512xf32>
    %41 = arith.cmpf ogt, %39, %40 : vector<32x512xf32>
    %42 = math.exp %39 : vector<32x512xf32>
    %cst_29 = arith.constant 1.000000e+00 : f32
    %43 = vector.broadcast %cst_29 : f32 to vector<32x512xf32>
    %44 = arith.subf %42, %43 : vector<32x512xf32>
    %cst_30 = arith.constant 1.67326319 : f32
    %45 = vector.broadcast %cst_30 : f32 to vector<32x512xf32>
    %46 = arith.mulf %45, %44 : vector<32x512xf32>
    %47 = arith.select %41, %39, %46 : vector<32x512xi1>, vector<32x512xf32>
    %cst_31 = arith.constant 1.05070102 : f32
    %48 = vector.broadcast %cst_31 : f32 to vector<32x512xf32>
    %49 = arith.mulf %48, %47 : vector<32x512xf32>
    %c0_32 = arith.constant 0 : index
    %c0_33 = arith.constant 0 : index
    %50 = vector.load %arg10[%c0_32, %c0_33] : memref<1x32xf32, #tpu.memory_space<vmem>>, vector<1x32xf32>
    %cst_34 = arith.constant dense<0.000000e+00> : vector<1x512xf32>
    %51 = tpu.matmul %50, %49, %cst_34 {dimension_numbers = #tpu.dot_dimension_numbers<[1], [0], [0], [1], [0, 0, 1, 1], [], []>} : vector<1x32xf32>, vector<32x512xf32>, vector<1x512xf32> -> vector<1x512xf32>
    %c0_35 = arith.constant 0 : index
    %c0_36 = arith.constant 0 : index
    %52 = vector.load %arg11[%c0_35, %c0_36] : memref<1x1xf32, #tpu.memory_space<vmem>>, vector<1x1xf32>
    %53 = vector.broadcast %52 : vector<1x1xf32> to vector<1x512xf32>
    %54 = arith.addf %51, %53 : vector<1x512xf32>
    %c0_37 = arith.constant 0 : index
    %c0_38 = arith.constant 0 : index
    %55 = vector.load %arg12[%c0_37, %c0_38] : memref<1x512xf32, #tpu.memory_space<vmem>>, vector<1x512xf32>
    tpu.vector_store %arg12[%c0_37, %c0_38], %54 {strides = array<i32>} : memref<1x512xf32, #tpu.memory_space<vmem>>, vector<1x512xf32>,
    return
  }
  func.func @transform_0(%arg0: i32) -> (i32, i32) {
    %c0_i32 = arith.constant 0 : i32
    %c0_i32_0 = arith.constant 0 : i32
    return %c0_i32, %arg0 : i32, i32
  }
  func.func @transform_1(%arg0: i32) -> (i32, i32) {
    %c0_i32 = arith.constant 0 : i32
    %c0_i32_0 = arith.constant 0 : i32
    return %c0_i32, %arg0 : i32, i32
  }
  func.func @transform_2(%arg0: i32) -> (i32, i32) {
    %c0_i32 = arith.constant 0 : i32
    %c0_i32_0 = arith.constant 0 : i32
    %c0_i32_1 = arith.constant 0 : i32
    return %c0_i32, %c0_i32_0 : i32, i32
  }
  func.func @transform_3(%arg0: i32) -> (i32, i32) {
    %c0_i32 = arith.constant 0 : i32
    %c0_i32_0 = arith.constant 0 : i32
    %c0_i32_1 = arith.constant 0 : i32
    return %c0_i32, %c0_i32_0 : i32, i32
  }
  func.func @transform_4(%arg0: i32) -> (i32, i32) {
    %c0_i32 = arith.constant 0 : i32
    %c0_i32_0 = arith.constant 0 : i32
    %c0_i32_1 = arith.constant 0 : i32
    return %c0_i32, %c0_i32_0 : i32, i32
  }
  func.func @transform_5(%arg0: i32) -> (i32, i32) {
    %c0_i32 = arith.constant 0 : i32
    %c0_i32_0 = arith.constant 0 : i32
    %c0_i32_1 = arith.constant 0 : i32
    return %c0_i32, %c0_i32_0 : i32, i32
  }
  func.func @transform_6(%arg0: i32) -> (i32, i32) {
    %c0_i32 = arith.constant 0 : i32
    %c0_i32_0 = arith.constant 0 : i32
    %c0_i32_1 = arith.constant 0 : i32
    return %c0_i32, %c0_i32_0 : i32, i32
  }
  func.func @transform_7(%arg0: i32) -> (i32, i32) {
    %c0_i32 = arith.constant 0 : i32
    %c0_i32_0 = arith.constant 0 : i32
    %c0_i32_1 = arith.constant 0 : i32
    return %c0_i32, %c0_i32_0 : i32, i32
  }
  func.func @transform_8(%arg0: i32) -> (i32, i32) {
    %c0_i32 = arith.constant 0 : i32
    %c0_i32_0 = arith.constant 0 : i32
    %c0_i32_1 = arith.constant 0 : i32
    return %c0_i32, %c0_i32_0 : i32, i32
  }
  func.func @transform_9(%arg0: i32) -> (i32, i32) {
    %c0_i32 = arith.constant 0 : i32
    %c0_i32_0 = arith.constant 0 : i32
    %c0_i32_1 = arith.constant 0 : i32
    return %c0_i32, %c0_i32_0 : i32, i32
  }
  func.func @transform_10(%arg0: i32) -> (i32, i32) {
    %c0_i32 = arith.constant 0 : i32
    %c0_i32_0 = arith.constant 0 : i32
    %c0_i32_1 = arith.constant 0 : i32
    return %c0_i32, %c0_i32_0 : i32, i32
  }
  func.func @transform_11(%arg0: i32) -> (i32, i32) {
    %c0_i32 = arith.constant 0 : i32
    %c0_i32_0 = arith.constant 0 : i32
    return %c0_i32, %arg0 : i32, i32
  }
}

</mosaic_0001>

<bundles_post_ra>
// kernel: tpu_custom_call.1
= control target key start
LH: loop header
LB: loop body
LE: loop exit
PB: predicated region body
PF: predicated region fallthrough
CT: control target
= control target key end

     0   :  { %s4200_s0 = inlined_call_operand.vmem [shape: f32[3,1024], index: 0, kind: input, shape index: {}]   ;;  %s4201_s1 = inlined_call_operand.vmem [shape: f32[1,1024], index: 1, kind: input, shape index: {}]   ;;  %s4202_s2 = inlined_call_operand.vmem [shape: f32[64,3], index: 2, kind: input, shape index: {}]   ;;  %s4203_s3 = inlined_call_operand.vmem [shape: f32[64,1], index: 3, kind: input, shape index: {}]   ;;  %s4204_s4 = inlined_call_operand.vmem [shape: f32[64,1], index: 4, kind: input, shape index: {}]   ;;  %s4205_s5 = inlined_call_operand.vmem [shape: f32[64,1], index: 5, kind: input, shape index: {}]   ;;  %s4206_s6 = inlined_call_operand.vmem [shape: f32[32,64], index: 6, kind: input, shape index: {}]   ;;  %s4207_s7 = inlined_call_operand.vmem [shape: f32[32,64], index: 7, kind: input, shape index: {}]   ;;  %s4208_s8 = inlined_call_operand.vmem [shape: f32[32,1], index: 8, kind: input, shape index: {}]   ;;  %s4209_s9 = inlined_call_operand.vmem [shape: f32[1,32], index: 9, kind: input, shape index: {}]   ;;  %s4210_s10 = inlined_call_operand.<no memory space> [shape: f32[1,1], index: 10, kind: input, shape index: {}]   ;;  %s4211_s11 = inlined_call_operand.hbm [shape: f32[1,1024], index: 11, kind: output, shape index: {}]  }
   0x1   :  { %v16_v0 = vstv %s4210_s10 }
   0x2   :  { %17 = vst [vmem:[#allocation2] sm:$0x1] %v16_v0 }
   0x3   :  { %18 = vsyncpa [#allocation4], 0 }
   0x4   :  { %20 = vsyncpa [#allocation4 + $0x1], 0  ;;  %s2913_s19 = smov 0   ;;  %s2915_s20 = smov 0  }
   0x5   :  { %s2917_s21 = smov 0   ;;  %s2919_s22 = smov 0  }
   0x6 LB: > { %s2934_s10 = sadd.s32 4294967295, %s2844_s22   ;;  %s2328_s23 = sadd.s32 4294967294, %s2844_s22   ;;  %s2844_s22 = sphi %s2919_s22, %s4306_s22   ;;  %s2840_s21 = sphi %s2917_s21, %s4305_s21   ;;  %s2836_s20 = sphi %s2915_s20, %s4304_s20   ;;  %s2832_s19 = sphi %s2913_s19, %s4303_s19  }
   0x7   : > { %s2938_s24 = sadd.s32 1, %s2844_s22   ;;  %s274_s25 = sadd.s32 1, %s2840_s21 }
   0x8   : > { %s271_s26 = ssub.s32 %s2844_s22, %s2938_s24  ;;  %p284_p0 = scmp.ne.s32.totalorder %s2840_s21, %s2836_s20 }
   0x9   : > { %p272_p1 = scmp.eq.s32.totalorder %s271_s26, 0  ;;  %p285_p2 = scmp.eq.s32.totalorder %s2934_s10, 1 }
   0xa   : > { %p290_p3 = scmp.ne.s32.totalorder %s2836_s20, %s2832_s19  ;;  %p291_p4 = scmp.eq.s32.totalorder %s2328_s23, 1 }
   0xb   : > { %s2949_s27 = scalar_select %p272_p1, %s2840_s21, %s274_s25  }
   0xc   : > { %p2951_p5 = por %p285_p2, %p284_p0  ;;  %p2955_p6 = por %p291_p4, %p290_p3 }
   0xd   : > { %p2331_p7 = scmp.ge.s32.totalorder %s2844_s22, 1  ;;  %p353_p8 = scmp.lt.s32.totalorder %s2844_s22, 3 }
   0xf   : > { %p354_p9 = pnand %p2331_p7, %p353_p8 }
  0x11   : > { %357 = sbr.rel (%p354_p9) target bundleno = 917 (0x395), region = 64 }
  0x18   : > { %s2333_s30 = sshll.u32 %s2934_s10, 2  ;;  %v4212_v1 = vlaneseq  ;;  %v4214_v2 = vmov 0.0   ;;  %v2847_v4 = vmov 0   ;;  %vm496_vm0 = vcmask 1042432   ;;  %v964_v9 = vld [vmem:[%s4205_s5] sm:$0xff]  ;;  %v966_v10 = vld [vmem:[%s4205_s5 + $0x10] sm:$0xff] }
  0x19   : > { %p398_p10 = scmp.lt.s32.totalorder %s2333_s30, 7  ;;  %569 = vmatprep.mubr.f32.mxu0 %v4214_v2  ;;  %682 = vmatprep.mubr.f32.mxu1 %v4214_v2  ;;  %v409_v16 = vld [vmem:[%s4202_s2] sm:$0xff]  ;;  %vm471_vm1 = vcmask 23552   ;;  %vm1054_vm2 = vcmask 1040384   ;;  %v410_v21 = vld [vmem:[%s4202_s2 + $0x8] sm:$0xff]  ;;  %v967_v23 = vld [vmem:[%s4205_s5 + $0x18] sm:$0xff] }
  0x1a   : > { %v2965_v3 = vshrl.u32 %v4212_v1, 7  ;;  %2618 = vset.pattern.permute.xlu0 %v2847_v4  ;;  %2619 = vset.pattern.permute.xlu1 %v2847_v4  ;;  %v965_v22 = vld [vmem:[%s4205_s5 + $0x8] sm:$0xff]  ;;  %v411_v24 = vld [vmem:[%s4202_s2 + $0x10] sm:$0xff]  ;;  %v968_v25 = vld [vmem:[%s4205_s5 + $0x20] sm:$0xff]  ;;  %vm1029_vm3 = vcmask 7168   ;;  %s394_s26 = sand.u32 1, %s2836_s20  }
  0x1b   : > { %s4308_s30 = smov (!%p398_p10, %s2333_s30), 7  ;;  %974 = vperm.xlu0 %2618, %v964_v9   ;;  %984 = vperm.xlu1 %2619, %v966_v10   ;;  %v969_v26 = vld [vmem:[%s4205_s5 + $0x28] sm:$0xff]  ;;  %v412_v27 = vld [vmem:[%s4202_s2 + $0x18] sm:$0xff]  ;;  %v970_v28 = vld [vmem:[%s4205_s5 + $0x30] sm:$0xff]  ;;  %s2332_s13 = sshll.u32 %s394_s26, 2 }
  0x1c   : > { %4235 = vst [vmem:[#allocation6_spill] sm:$0xff] %v2965_v3  ;;  %s2334_s12 = sshll.u32 %s4308_s30, 2  ;;  %s406_s15 = scalar_lea.vmem %s4201_s1, %s4308_s30  ;;  %v1019_v5 = vsub.s32 1, %v2965_v3  ;;  %v1027_v6 = vsub.s32 3, %v2965_v3  ;;  %v4213_v7 = vsub.s32 0, %v2965_v3  ;;  %v1023_v8 = vsub.s32 2, %v2965_v3 }
  0x1d   : > { %s401_s18 = scalar_lea.vmem %s4200_s0, %s2334_s12  ;;  %v963_v12 = vld [vmem:[%s406_s15] sm:$0xf]  ;;  %v971_v29 = vld [vmem:[%s4205_s5 + $0x38] sm:$0xff]  ;;  %v420_v32 = vld [vmem:[%s4203_s3 + $0x8] sm:$0xff]  ;;  %s2479_s30 = sshll.u32 %s2934_s10, 6 }
  0x1e   : > { %v417_v11 = vld [vmem:[%s401_s18] sm:$0x77]  ;;  %v418_v13 = vld [vmem:[%s401_s18 + $0x8] sm:$0x77]  ;;  %v1020_v17 = vrot.slane %v963_v12, %v1019_v5  ;;  %v1028_v18 = vrot.slane %v963_v12, %v1027_v6  ;;  %v1016_v19 = vrot.slane %v963_v12, %v4213_v7  ;;  %v1024_v20 = vrot.slane %v963_v12, %v1023_v8  ;;  %v421_v34 = vld [vmem:[%s4203_s3 + $0x10] sm:$0xff]  ;;  %s396_s12 = scalar_lea.vmem [#allocation3], %s2332_s13  ;;  %s4158_s17 = scalar_lea.hbm %s4211_s11, %s2479_s30 }
  0x1f   : > { %v469_v14 = vcombine.high %v417_v11, %v417_v11  ;;  %v470_v15 = vcombine.high %v418_v13, %v418_v13  ;;  %979 = vperm.xlu0 %2618, %v965_v22   ;;  %989 = vperm.xlu1 %2619, %v967_v23   ;;  %v413_v30 = vld [vmem:[%s4202_s2 + $0x20] sm:$0xff]  ;;  %v414_v33 = vld [vmem:[%s4202_s2 + $0x28] sm:$0xff]  ;;  %v422_v35 = vld [vmem:[%s4203_s3 + $0x18] sm:$0xff]  ;;  %s2260_s14 = sshll.u32 %s396_s12, 4  ;;  %s2246_s18 = scalar_lea.sflag [#allocation4], %s394_s26  ;;  %s4160_s14 = int_to_ptr.vmem [resolvable:$true] %s2260_s14 }
  0x20   : > { %v419_v31 = vld [vmem:[%s4203_s3] sm:$0xff]  ;;  %v415_v36 = vld [vmem:[%s4202_s2 + $0x30] sm:$0xff]  ;;  %v424_v38 = vld [vmem:[%s4203_s3 + $0x28] sm:$0xff]  ;;  %s2782_s23 = scalar_lea.vmem %s4160_s14, 64  ;;  %s2849_s10 = smov [#allocation3]  }
  0x21   : > { %2336 = vmatprep.subr.msk.mxu0 %vm496_vm0, %v469_v14  ;;  %2346 = vmatprep.subr.msk.mxu1 %vm496_vm0, %v470_v15  ;;  %v423_v37 = vld [vmem:[%s4203_s3 + $0x20] sm:$0xff]  ;;  %v416_v39 = vld [vmem:[%s4202_s2 + $0x38] sm:$0xff]  ;;  %v425_v40 = vld [vmem:[%s4203_s3 + $0x30] sm:$0xff]  ;;  %p2783_p11 = scmp.ne.s32.totalorder %s4160_s14, %s2782_s23  ;;  %s2786_s25 = sshll.u32 %s2849_s10, 4  ;;  %s2787_s25 = int_to_ptr.vmem [resolvable:$false] %s2786_s25 }
  0x22   : > { %2337 = vmatpush1.msk.msra.mxu0 %vm496_vm0, %v417_v11  ;;  %2347 = vmatpush1.msk.msra.mxu1 %vm496_vm0, %v418_v13  ;;  %v426_v41 = vld [vmem:[%s4203_s3 + $0x38] sm:$0xff]  ;;  %v955_v42 = vld [vmem:[%s4204_s4] sm:$0xff]  ;;  %v1903_v44 = vld [vmem:[%s4208_s8 + $0x8] sm:$0xff]  ;;  %s2788_s13 = scalar_lea.vmem %s2787_s25, 128  ;;  %p2789_p0 = scmp.lt.s32.totalorder %s4160_s14, %s2787_s25 }
  0x23   : > { %2338 = vmatmul.mubr.msk.f32.vlgmr.msra.gmra.mrb[0].mxu0 %vm471_vm1, %v409_v16  ;;  %2348 = vmatmul.mubr.msk.f32.vlgmr.msra.gmra.mrb[0].mxu1 %vm471_vm1, %v409_v16  ;;  %v1902_v43 = vld [vmem:[%s4208_s8] sm:$0xff]  ;;  %v956_v45 = vld [vmem:[%s4204_s4 + $0x8] sm:$0xff]  ;;  %v1904_v46 = vld [vmem:[%s4208_s8 + $0x10] sm:$0xff]  ;;  %p2784_p12 = pnand %p2783_p11, %p2951_p5  ;;  %p2790_p1 = scmp.lt.s32.totalorder %s2788_s13, %s2782_s23 }
  0x24   : > { %575 = vmatprep.mubr.f32.mxu0 %v4214_v2  ;;  %688 = vmatprep.mubr.f32.mxu1 %v4214_v2  ;;  %v1905_v47 = vld [vmem:[%s4208_s8 + $0x18] sm:$0xff]  ;;  %v957_v48 = vld [vmem:[%s4204_s4 + $0x10] sm:$0xff]  ;;  %v2055_v49 = vld [vmem:[#allocation2] sm:$0x1] }
  0x25   : > { %2388 = vmatprep.subr.msk.mxu0 %vm1054_vm2, %v1020_v17  ;;  %2398 = vmatprep.subr.msk.mxu1 %vm1054_vm2, %v1028_v18  ;;  %v958_v50 = vld [vmem:[%s4204_s4 + $0x18] sm:$0xff]  ;;  %v959_v51 = vld [vmem:[%s4204_s4 + $0x20] sm:$0xff]  ;;  %v960_v52 = vld [vmem:[%s4204_s4 + $0x28] sm:$0xff]  ;;  %p2785_p13 = pneg %p2784_p12  ;;  %p2791_p2 = por %p2790_p1, %p2789_p0 }
  0x26   : > { %2389 = vmatpush1.msk.msra.mxu0 %vm1054_vm2, %v1016_v19  ;;  %2399 = vmatpush1.msk.msra.mxu1 %vm1054_vm2, %v1024_v20  ;;  %v961_v53 = vld [vmem:[%s4204_s4 + $0x30] sm:$0xff]  ;;  %v962_v54 = vld [vmem:[%s4204_s4 + $0x38] sm:$0xff] }
  0x27   : > { %2339 = vmatmul.mubr.msk.f32.gmra.mrb[2].mxu0 %vm471_vm1, %v410_v21  ;;  %2349 = vmatmul.mubr.msk.f32.gmra.mrb[2].mxu1 %vm471_vm1, %v410_v21  ;;  %p2792_p3 = pnand %p2791_p2, %p2785_p13 }
  0x28   : > { %581 = vmatprep.mubr.f32.mxu0 %v4214_v2  ;;  %694 = vmatprep.mubr.f32.mxu1 %v4214_v2 }
  0x29   : > { %994 = vperm.xlu0 %2618, %v968_v25   ;;  %999 = vperm.xlu1 %2619, %v969_v26  }
  0x2b   : > { %2340 = vmatmul.mubr.msk.f32.gmra.mrb[4].mxu0 %vm471_vm1, %v411_v24  ;;  %2350 = vmatmul.mubr.msk.f32.gmra.mrb[4].mxu1 %vm471_vm1, %v411_v24 }
  0x2c   : > { %587 = vmatprep.mubr.f32.mxu0 %v4214_v2  ;;  %700 = vmatprep.mubr.f32.mxu1 %v4214_v2 }
  0x2d   : > { %1004 = vperm.xlu0 %2618, %v970_v28   ;;  %1009 = vperm.xlu1 %2619, %v971_v29  }
  0x2f   : > { %2341 = vmatmul.mubr.msk.f32.gmra.mrb[6].mxu0 %vm471_vm1, %v412_v27  ;;  %2351 = vmatmul.mubr.msk.f32.gmra.mrb[6].mxu1 %vm471_vm1, %v412_v27 }
  0x30   : > { %593 = vmatprep.mubr.f32.mxu0 %v4214_v2  ;;  %706 = vmatprep.mubr.f32.mxu1 %v4214_v2 }
  0x31   : > { %429 = vperm.xlu0 %2618, %v419_v31   ;;  %434 = vperm.xlu1 %2619, %v420_v32  }
  0x33   : > { %2342 = vmatmul.mubr.msk.f32.gmra.mrb[8].mxu0 %vm471_vm1, %v413_v30  ;;  %2352 = vmatmul.mubr.msk.f32.gmra.mrb[8].mxu1 %vm471_vm1, %v413_v30 }
  0x34   : > { %599 = vmatprep.mubr.f32.mxu0 %v4214_v2  ;;  %712 = vmatprep.mubr.f32.mxu1 %v4214_v2 }
  0x35   : > { %439 = vperm.xlu0 %2618, %v421_v34   ;;  %444 = vperm.xlu1 %2619, %v422_v35  }
  0x37   : > { %2343 = vmatmul.mubr.msk.f32.gmra.mrb[10].mxu0 %vm471_vm1, %v414_v33  ;;  %2353 = vmatmul.mubr.msk.f32.gmra.mrb[10].mxu1 %vm471_vm1, %v414_v33 }
  0x38   : > { %605 = vmatprep.mubr.f32.mxu0 %v4214_v2  ;;  %718 = vmatprep.mubr.f32.mxu1 %v4214_v2 }
  0x39   : > { %449 = vperm.xlu0 %2618, %v423_v37   ;;  %454 = vperm.xlu1 %2619, %v424_v38  }
  0x3b   : > { %2344 = vmatmul.mubr.msk.f32.gmra.mrb[12].mxu0 %vm471_vm1, %v415_v36  ;;  %2354 = vmatmul.mubr.msk.f32.gmra.mrb[12].mxu1 %vm471_vm1, %v415_v36 }
  0x3c   : > { %611 = vmatprep.mubr.f32.mxu0 %v4214_v2  ;;  %724 = vmatprep.mubr.f32.mxu1 %v4214_v2 }
  0x3d   : > { %459 = vperm.xlu0 %2618, %v425_v40   ;;  %464 = vperm.xlu1 %2619, %v426_v41  }
  0x3f   : > { %2345 = vmatmul.mubr.msk.f32.gmra.mrb[14].mxu0 %vm471_vm1, %v416_v39  ;;  %2355 = vmatmul.mubr.msk.f32.gmra.mrb[14].mxu1 %vm471_vm1, %v416_v39 }
  0x40   : > { %1127 = vmatprep.mubr.f32.mxu0 %v4214_v2  ;;  %1240 = vmatprep.mubr.f32.mxu1 %v4214_v2 }
  0x41   : > { %1908 = vperm.xlu0 %2618, %v1902_v43   ;;  %1913 = vperm.xlu1 %2619, %v1903_v44  }
  0x43   : > { %2390 = vmatmul.mubr.msk.f32.vlgmr.msra.gmra.mrb[16].mxu0 %vm1029_vm3, %v955_v42  ;;  %2400 = vmatmul.mubr.msk.f32.vlgmr.msra.gmra.mrb[16].mxu1 %vm1029_vm3, %v955_v42 }
  0x44   : > { %1133 = vmatprep.mubr.f32.mxu0 %v4214_v2  ;;  %1246 = vmatprep.mubr.f32.mxu1 %v4214_v2 }
  0x45   : > { %1918 = vperm.xlu0 %2618, %v1904_v46   ;;  %1923 = vperm.xlu1 %2619, %v1905_v47  }
  0x47   : > { %2391 = vmatmul.mubr.msk.f32.gmra.mrb[18].mxu0 %vm1029_vm3, %v956_v45  ;;  %2401 = vmatmul.mubr.msk.f32.gmra.mrb[18].mxu1 %vm1029_vm3, %v956_v45 }
  0x48   : > { %1139 = vmatprep.mubr.f32.mxu0 %v4214_v2  ;;  %1252 = vmatprep.mubr.f32.mxu1 %v4214_v2 }
  0x49   : > { %2058 = vperm.xlu0 %2618, %v2055_v49  }
  0x4b   : > { %2392 = vmatmul.mubr.msk.f32.gmra.mrb[20].mxu0 %vm1029_vm3, %v957_v48  ;;  %2402 = vmatmul.mubr.msk.f32.gmra.mrb[20].mxu1 %vm1029_vm3, %v957_v48 }
  0x4c   : > { %1145 = vmatprep.mubr.f32.mxu0 %v4214_v2  ;;  %1258 = vmatprep.mubr.f32.mxu1 %v4214_v2 }
  0x4f   : > { %2393 = vmatmul.mubr.msk.f32.gmra.mrb[22].mxu0 %vm1029_vm3, %v958_v50  ;;  %2403 = vmatmul.mubr.msk.f32.gmra.mrb[22].mxu1 %vm1029_vm3, %v958_v50 }
  0x50   : > { %1151 = vmatprep.mubr.f32.mxu0 %v4214_v2  ;;  %1264 = vmatprep.mubr.f32.mxu1 %v4214_v2 }
  0x53   : > { %2394 = vmatmul.mubr.msk.f32.gmra.mrb[24].mxu0 %vm1029_vm3, %v959_v51  ;;  %2404 = vmatmul.mubr.msk.f32.gmra.mrb[24].mxu1 %vm1029_vm3, %v959_v51 }
  0x54   : > { %1157 = vmatprep.mubr.f32.mxu0 %v4214_v2  ;;  %1270 = vmatprep.mubr.f32.mxu1 %v4214_v2 }
  0x57   : > { %2395 = vmatmul.mubr.msk.f32.gmra.mrb[26].mxu0 %vm1029_vm3, %v960_v52  ;;  %2405 = vmatmul.mubr.msk.f32.gmra.mrb[26].mxu1 %vm1029_vm3, %v960_v52 }
  0x58   : > { %1163 = vmatprep.mubr.f32.mxu0 %v4214_v2  ;;  %1276 = vmatprep.mubr.f32.mxu1 %v4214_v2 }
  0x5b   : > { %2396 = vmatmul.mubr.msk.f32.gmra.mrb[28].mxu0 %vm1029_vm3, %v961_v53  ;;  %2406 = vmatmul.mubr.msk.f32.gmra.mrb[28].mxu1 %vm1029_vm3, %v961_v53 }
  0x5c   : > { %1169 = vmatprep.mubr.f32.mxu0 %v4214_v2  ;;  %1282 = vmatprep.mubr.f32.mxu1 %v4214_v2 }
  0x5f   : > { %2397 = vmatmul.mubr.msk.f32.gmra.mrb[30].mxu0 %vm1029_vm3, %v962_v54  ;;  %2407 = vmatmul.mubr.msk.f32.gmra.mrb[30].mxu1 %vm1029_vm3, %v962_v54 }
  0x60   : > { %1598 = vmatprep.mubr.f32.mxu0 %v4214_v2  ;;  %1687 = vmatprep.mubr.f32.mxu1 %v4214_v2 }
  0x9a   : > { %v3155_v55 = vpop.permute.xlu0 %974  ;;  %v3157_v56 = vpop.permute.xlu1 %984 }
  0x9e   : > { %v3159_v57 = vpop.permute.xlu0 %979  ;;  %v3161_v58 = vpop.permute.xlu1 %989 }
  0xa8   : > { %v3163_v59 = vpop.permute.xlu0 %994  ;;  %v3165_v60 = vpop.permute.xlu1 %999 }
  0xa9   : > { %4236 = vst [vmem:[#allocation7_spill] sm:$0xff] %v3165_v60 }
  0xac   : > { %v3167_v61 = vpop.permute.xlu0 %1004  ;;  %v3169_v62 = vpop.permute.xlu1 %1009 }
  0xad   : > { %4237 = vst [vmem:[#allocation8_spill] sm:$0xff] %v3167_v61  ;;  %4238 = vst [vmem:[#allocation9_spill] sm:$0xff] %v3169_v62 }
  0xb0   : > { %v430_v63 = vpop.permute.xlu0 %429  ;;  %v435_v12 = vpop.permute.xlu1 %434 }
  0xb4   : > { %v440_v20 = vpop.permute.xlu0 %439  ;;  %v3194_v32 = vpop.permute.xlu1 %444 }
  0xf6   : > { %v571_v0 = vpop.f32.mrb[0].mxu0  ;;  %v684_v4 = vpop.f32.mrb[0].mxu1 }
  0xf7   : > { %v3171_v5 = vadd.f32 %v571_v0, %v430_v63  ;;  %v3173_v6 = vadd.f32 %v684_v4, %v430_v63  ;;  %v573_v8 = vpop.f32.mrb[1].mxu0  ;;  %v686_v9 = vpop.f32.mrb[1].mxu1 }
  0xf8   : > { %v3177_v13 = vadd.f32 %v573_v8, %v430_v63  ;;  %v3185_v25 = vadd.f32 %v686_v9, %v430_v63 }
  0xf9   : > { %v763_v10 = vmul.f32 1.442695, %v3171_v5  ;;  %v767_v11 = vmul.f32 1.442695, %v3173_v6  ;;  %vm731_vm4 = vcmp.gt.f32.partialorder %v3171_v5, 0.0  ;;  %vm733_vm5 = vcmp.gt.f32.partialorder %v3173_v6, 0.0 }
  0xfa   : > { %v577_v14 = vpop.f32.mrb[2].mxu0  ;;  %v690_v15 = vpop.f32.mrb[2].mxu1  ;;  %v765_v24 = vmul.f32 1.442695, %v3177_v13  ;;  %v769_v36 = vmul.f32 1.442695, %v3185_v25 }
  0xfb   : > { %2622 = vpow2.f32 %v763_v10  ;;  %v3179_v16 = vadd.f32 %v577_v14, %v435_v12  ;;  %v3181_v17 = vadd.f32 %v690_v15, %v435_v12  ;;  %v579_v18 = vpop.f32.mrb[3].mxu0  ;;  %v692_v19 = vpop.f32.mrb[3].mxu1  ;;  %vm732_vm8 = vcmp.gt.f32.partialorder %v3177_v13, 0.0 }
  0xfc   : > { %2624 = vpow2.f32 %v767_v11  ;;  %v3192_v31 = vadd.f32 %v579_v18, %v435_v12  ;;  %v3208_v46 = vadd.f32 %v692_v19, %v435_v12  ;;  %vm734_vm9 = vcmp.gt.f32.partialorder %v3185_v25, 0.0 }
  0xfd   : > { %v771_v21 = vmul.f32 1.442695, %v3179_v16  ;;  %v775_v26 = vmul.f32 1.442695, %v3181_v17  ;;  %vm735_vm6 = vcmp.gt.f32.partialorder %v3179_v16, 0.0  ;;  %vm737_vm7 = vcmp.gt.f32.partialorder %v3181_v17, 0.0 }
  0xfe   : > { %v583_v22 = vpop.f32.mrb[4].mxu0  ;;  %v696_v23 = vpop.f32.mrb[4].mxu1  ;;  %v773_v42 = vmul.f32 1.442695, %v3192_v31  ;;  %v777_v9 = vmul.f32 1.442695, %v3208_v46 }
  0xff   : > { %2626 = vpow2.f32 %v771_v21  ;;  %v3188_v27 = vadd.f32 %v583_v22, %v440_v20  ;;  %v3190_v28 = vadd.f32 %v696_v23, %v440_v20  ;;  %v585_v29 = vpop.f32.mrb[5].mxu0  ;;  %v698_v30 = vpop.f32.mrb[5].mxu1  ;;  %vm736_vm14 = vcmp.gt.f32.partialorder %v3192_v31, 0.0 }
 0x100   : > { %2628 = vpow2.f32 %v775_v26  ;;  %v3215_v51 = vadd.f32 %v585_v29, %v440_v20  ;;  %v3222_v0 = vadd.f32 %v698_v30, %v440_v20  ;;  %vm738_vm15 = vcmp.gt.f32.partialorder %v3208_v46, 0.0 }
 0x101   : > { %v779_v33 = vmul.f32 1.442695, %v3188_v27  ;;  %2630 = vpow2.f32 %v765_v24  ;;  %v783_v37 = vmul.f32 1.442695, %v3190_v28  ;;  %vm739_vm10 = vcmp.gt.f32.partialorder %v3188_v27, 0.0 }
 0x102   : > { %v589_v34 = vpop.f32.mrb[6].mxu0  ;;  %v702_v35 = vpop.f32.mrb[6].mxu1  ;;  %v781_v14 = vmul.f32 1.442695, %v3215_v51  ;;  %v785_v26 = vmul.f32 1.442695, %v3222_v0 }
 0x103   : > { %v591_v38 = vpop.f32.mrb[7].mxu0  ;;  %2632 = vpow2.f32 %v779_v33  ;;  %v3200_v39 = vadd.f32 %v589_v34, %v3194_v32  ;;  %v3202_v40 = vpop.f32.mrb[7].mxu1  ;;  %v3206_v43 = vadd.f32 %v702_v35, %v3194_v32  ;;  %vm741_vm11 = vcmp.gt.f32.partialorder %v3190_v28, 0.0 }
 0x104   : > { %2634 = vpow2.f32 %v783_v37  ;;  %v3229_v15 = vadd.f32 %v591_v38, %v3194_v32  ;;  %vm740_vm0 = vcmp.gt.f32.partialorder %v3215_v51, 0.0  ;;  %vm742_vm1 = vcmp.gt.f32.partialorder %v3222_v0, 0.0 }
 0x105   : > { %v2623_v41 = vpop.eup %2622  ;;  %v787_v47 = vmul.f32 1.442695, %v3200_v39  ;;  %2636 = vpow2.f32 %v769_v36  ;;  %v791_v52 = vmul.f32 1.442695, %v3206_v43  ;;  %vm743_vm12 = vcmp.gt.f32.partialorder %v3200_v39, 0.0 }
 0x106   : > { %v2625_v44 = vpop.eup %2624  ;;  %v2356_v45 = vadd.f32 -1.0, %v2623_v41  ;;  %v3211_v48 = vpop.f32.mrb[8].mxu0  ;;  %vm745_vm13 = vcmp.gt.f32.partialorder %v3206_v43, 0.0  ;;  %vm744_vm2 = vcmp.gt.f32.partialorder %v3229_v15, 0.0 }
 0x107   : > { %v3213_v49 = vpop.f32.mrb[8].mxu1  ;;  %v2358_v50 = vadd.f32 -1.0, %v2625_v44  ;;  %v3218_v53 = vpop.f32.mrb[9].mxu0  ;;  %2638 = vpow2.f32 %v787_v47 }
 0x108   : > { %v3220_v54 = vpop.f32.mrb[9].mxu1  ;;  %v859_v63 = vmul.f32 1.6732632, %v2356_v45  ;;  %2640 = vpow2.f32 %v791_v52  ;;  %v3257_v47 = vpop.permute.xlu0 %449 }
 0x109   : > { %v2627_v4 = vpop.eup %2626  ;;  %v861_v8 = vmul.f32 1.6732632, %v2358_v50  ;;  %2642 = vpow2.f32 %v773_v42 }
 0x10a   : > { %v3225_v10 = vpop.f32.mrb[10].mxu0  ;;  %v2629_v11 = vpop.eup %2628  ;;  %v2360_v12 = vadd.f32 -1.0, %v2627_v4  ;;  %v891_v23 = vsel %vm731_vm4, %v3171_v5, %v859_v63  ;;  %2644 = vpow2.f32 %v777_v9  ;;  %v789_v5 = vmul.f32 1.442695, %v3229_v15 }
 0x10b   : > { %v3231_v18 = vpop.f32.mrb[10].mxu1  ;;  %v2362_v19 = vadd.f32 -1.0, %v2629_v11  ;;  %v3235_v20 = vpop.f32.mrb[11].mxu0  ;;  %v893_v30 = vsel %vm733_vm5, %v3173_v6, %v861_v8  ;;  %2646 = vpow2.f32 %v781_v14  ;;  %v3252_v42 = vmul.f32 1.050701, %v891_v23 }
 0x10c   : > { %v3237_v21 = vpop.f32.mrb[11].mxu1  ;;  %v2631_v22 = vpop.eup %2630  ;;  %v863_v24 = vmul.f32 1.6732632, %v2360_v12  ;;  %v3261_v52 = vmul.f32 1.050701, %v893_v30  ;;  %2648 = vpow2.f32 %v785_v26  ;;  %v3267_v4 = vadd.f32 %v3202_v40, %v3194_v32 }
 0x10d   : > { %v2633_v29 = vpop.eup %2632  ;;  %v865_v33 = vmul.f32 1.6732632, %v2362_v19  ;;  %4239 = vst [vmem:[#allocation10_spill] sm:$0xff] %v3252_v42  ;;  %v2357_v9 = vadd.f32 -1.0, %v2631_v22  ;;  %2650 = vpow2.f32 %v789_v5  ;;  %v3281_v40 = vadd.f32 %v3211_v48, %v3257_v47 }
 0x10e   : > { %v3244_v34 = vpop.f32.mrb[12].mxu0  ;;  %v2635_v35 = vpop.eup %2634  ;;  %v895_v36 = vsel %vm735_vm6, %v3179_v16, %v863_v24  ;;  %v2364_v37 = vadd.f32 -1.0, %v2633_v29  ;;  %4241 = vst [vmem:[#allocation12_spill] sm:$0xff] %v3261_v52  ;;  %v3296_v5 = vadd.f32 %v3213_v49, %v3257_v47  ;;  %v3308_v49 = vadd.f32 %v3218_v53, %v3257_v47 }
 0x10f   : > { %v3248_v38 = vpop.f32.mrb[12].mxu1  ;;  %v3250_v41 = vpop.f32.mrb[13].mxu0  ;;  %v3254_v6 = vmul.f32 1.050701, %v895_v36  ;;  %v897_v44 = vsel %vm737_vm7, %v3181_v17, %v865_v33  ;;  %v2366_v45 = vadd.f32 -1.0, %v2635_v35  ;;  %vm746_vm3 = vcmp.gt.f32.partialorder %v3267_v4, 0.0 }
 0x110   : > { %v3259_v50 = vpop.f32.mrb[13].mxu1  ;;  %v2637_v16 = vpop.eup %2636  ;;  %v3263_v63 = vmul.f32 1.050701, %v897_v44  ;;  %v867_v11 = vmul.f32 1.6732632, %v2364_v37  ;;  %vm747_vm4 = vcmp.gt.f32.partialorder %v3281_v40, 0.0 }
 0x111   : > { %4240 = vst [vmem:[#allocation11_spill] sm:$0xff] %v3254_v6  ;;  %v2639_v8 = vpop.eup %2638  ;;  %v869_v32 = vmul.f32 1.6732632, %v2366_v45  ;;  %v2359_v29 = vadd.f32 -1.0, %v2637_v16  ;;  %v793_v35 = vmul.f32 1.442695, %v3267_v4 }
 0x112   : > { %4242 = vst [vmem:[#allocation13_spill] sm:$0xff] %v3263_v63  ;;  %v3272_v12 = vpop.f32.mrb[14].mxu0  ;;  %v3274_v14 = vpop.f32.mrb[14].mxu1  ;;  %v2368_v30 = vadd.f32 -1.0, %v2639_v8  ;;  %v860_v48 = vmul.f32 1.6732632, %v2357_v9  ;;  %v899_v36 = vsel %vm739_vm10, %v3188_v27, %v867_v11 }
 0x113   : > { %v2641_v19 = vpop.eup %2640  ;;  %v3283_v22 = vpop.f32.mrb[15].mxu0  ;;  %v901_v45 = vsel %vm741_vm11, %v3190_v28, %v869_v32  ;;  %v795_v8 = vmul.f32 1.442695, %v3281_v40  ;;  %v862_v7 = vmul.f32 1.6732632, %v2359_v29  ;;  %2652 = vpow2.f32 %v793_v35 }
 0x114   : > { %v3285_v24 = vpop.f32.mrb[15].mxu1  ;;  %v2643_v26 = vpop.eup %2642  ;;  %v2370_v33 = vadd.f32 -1.0, %v2641_v19  ;;  %v871_v37 = vmul.f32 1.6732632, %v2368_v30  ;;  %v799_v27 = vmul.f32 1.442695, %v3296_v5 }
 0x115   : > { %v2361_v44 = vadd.f32 -1.0, %v2643_v26  ;;  %v2645_v19 = vpop.eup %2644  ;;  %v3314_v26 = vmul.f32 1.050701, %v899_v36  ;;  %2654 = vpow2.f32 %v795_v8  ;;  %v892_v36 = vsel %vm732_vm8, %v3177_v13, %v860_v48 }
 0x116   : > { %v873_v16 = vmul.f32 1.6732632, %v2370_v33  ;;  %v3300_v1 = vpop.f32.mrb[16].mxu0  ;;  %v903_v9 = vsel %vm743_vm12, %v3200_v39, %v871_v37  ;;  %v3310_v11 = vpop.f32.mrb[16].mxu1  ;;  %v3321_v33 = vmul.f32 1.050701, %v901_v45  ;;  %2656 = vpow2.f32 %v799_v27 }
 0x117   : > { %v3312_v28 = vpop.f32.mrb[17].mxu0  ;;  %v2647_v32 = vpop.eup %2646  ;;  %4243 = vst [vmem:[#allocation14_spill] sm:$0xff] %v3314_v26  ;;  %v3316_v30 = vmul.f32 1.050701, %v903_v9  ;;  %v864_v9 = vmul.f32 1.6732632, %v2361_v44  ;;  %v3346_v13 = vadd.f32 %v3220_v54, %v3257_v47 }
 0x118   : > { %v905_v29 = vsel %vm745_vm13, %v3206_v43, %v873_v16  ;;  %v455_v39 = vpop.permute.xlu1 %454  ;;  %4245 = vst [vmem:[#allocation16_spill] sm:$0xff] %v3321_v33  ;;  %v3325_v53 = vpop.f32.mrb[17].mxu1  ;;  %v894_v16 = vsel %vm734_vm9, %v3185_v25, %v862_v7  ;;  %v2363_v27 = vadd.f32 -1.0, %v2645_v19  ;;  %v2365_v43 = vadd.f32 -1.0, %v2647_v32 }
 0x119   : > { %4244 = vst [vmem:[#allocation15_spill] sm:$0xff] %v3316_v30  ;;  %v3323_v37 = vmul.f32 1.050701, %v905_v29  ;;  %v2649_v2 = vpop.eup %2648  ;;  %v797_v29 = vmul.f32 1.442695, %v3308_v49  ;;  %v3351_v17 = vadd.f32 %v3225_v10, %v455_v39  ;;  %v3354_v3 = vadd.f32 %v3231_v18, %v455_v39  ;;  %v3356_v7 = vpop.permute.xlu0 %459 }
 0x11a   : > { %v3327_v23 = vpop.f32.mrb[18].mxu0  ;;  %v3334_v35 = vpop.f32.mrb[18].mxu1  ;;  %v2367_v25 = vadd.f32 -1.0, %v2649_v2  ;;  %v3365_v19 = vmul.f32 1.050701, %v892_v36  ;;  %v896_v18 = vsel %vm736_vm14, %v3192_v31, %v864_v9  ;;  %v3382_v31 = vadd.f32 %v3244_v34, %v3356_v7 }
 0x11b   : > { %4246 = vst [vmem:[#allocation17_spill] sm:$0xff] %v3323_v37  ;;  %v3336_v45 = vpop.f32.mrb[19].mxu0  ;;  %v3348_v48 = vpop.f32.mrb[19].mxu1  ;;  %v3367_v10 = vmul.f32 1.050701, %v894_v16  ;;  %2658 = vpow2.f32 %v797_v29  ;;  %v3387_v29 = vadd.f32 %v3235_v20, %v455_v39  ;;  %v3409_v42 = vadd.f32 %v3237_v21, %v455_v39 }
 0x11c   : > { %v2651_v44 = vpop.eup %2650  ;;  %4247 = vst [vmem:[#allocation18_spill] sm:$0xff] %v3365_v19  ;;  %v803_v32 = vmul.f32 1.442695, %v3351_v17  ;;  %v801_v2 = vmul.f32 1.442695, %v3346_v13  ;;  %v3376_v37 = vpop.permute.xlu1 %464  ;;  %vm749_vm5 = vcmp.gt.f32.partialorder %v3296_v5, 0.0 }
 0x11d   : > { %4248 = vst [vmem:[#allocation19_spill] sm:$0xff] %v3367_v10  ;;  %v2369_v8 = vadd.f32 -1.0, %v2651_v44  ;;  %v807_v33 = vmul.f32 1.442695, %v3354_v3  ;;  %v866_v16 = vmul.f32 1.6732632, %v2363_v27  ;;  %v3391_v44 = vadd.f32 %v3248_v38, %v3356_v7 }
 0x11e   : > { %v3361_v54 = vpop.f32.mrb[20].mxu0  ;;  %v3363_v47 = vpop.f32.mrb[20].mxu1  ;;  %v868_v26 = vmul.f32 1.6732632, %v2365_v43  ;;  %2660 = vpow2.f32 %v803_v32  ;;  %v870_v30 = vmul.f32 1.6732632, %v2367_v25  ;;  %v3402_v25 = vadd.f32 %v3272_v12, %v3376_v37 }
 0x11f   : > { %v3378_v36 = vpop.f32.mrb[21].mxu0  ;;  %v3384_v9 = vpop.f32.mrb[21].mxu1  ;;  %2662 = vpow2.f32 %v807_v33  ;;  %v3397_v32 = vmul.f32 1.050701, %v896_v18  ;;  %v811_v34 = vmul.f32 1.442695, %v3382_v31  ;;  %v898_v10 = vsel %vm738_vm15, %v3208_v46, %v866_v16 }
 0x120   : > { %v2653_v43 = vpop.eup %2652  ;;  %v872_v38 = vmul.f32 1.6732632, %v2369_v8  ;;  %2664 = vpow2.f32 %v801_v2  ;;  %v815_v6 = vmul.f32 1.442695, %v3391_v44  ;;  %v3417_v12 = vadd.f32 %v3250_v41, %v3356_v7 }
 0x121   : > { %4249 = vst [vmem:[#allocation20_spill] sm:$0xff] %v3397_v32  ;;  %v2655_v63 = vpop.eup %2654  ;;  %2666 = vpow2.f32 %v811_v34  ;;  %v900_v8 = vsel %vm740_vm0, %v3215_v51, %v868_v26  ;;  %v902_v21 = vsel %vm742_vm1, %v3222_v0, %v870_v30  ;;  %v805_v39 = vmul.f32 1.442695, %v3387_v29 }
 0x122   : > { %v3393_v52 = vpop.f32.mrb[22].mxu0  ;;  %v3395_v27 = vpop.f32.mrb[22].mxu1  ;;  %v2372_v32 = vadd.f32 -1.0, %v2655_v63  ;;  %2668 = vpow2.f32 %v815_v6  ;;  %v2371_v2 = vadd.f32 -1.0, %v2653_v43  ;;  %v819_v16 = vmul.f32 1.442695, %v3402_v25 }
 0x123   : > { %v3404_v33 = vpop.f32.mrb[23].mxu0  ;;  %v3406_v20 = vpop.f32.mrb[23].mxu1  ;;  %v3434_v51 = vadd.f32 %v3274_v14, %v3376_v37  ;;  %v3440_v30 = vmul.f32 1.050701, %v898_v10  ;;  %v904_v6 = vsel %vm744_vm2, %v3229_v15, %v872_v38  ;;  %v809_v43 = vmul.f32 1.442695, %v3409_v42 }
 0x124   : > { %v2657_v18 = vpop.eup %2656  ;;  %v875_v34 = vmul.f32 1.6732632, %v2372_v32  ;;  %2670 = vpow2.f32 %v819_v16  ;;  %v3449_v62 = vmul.f32 1.050701, %v900_v8  ;;  %v3451_v61 = vmul.f32 1.050701, %v902_v21 }
 0x125   : > { %v2374_v41 = vadd.f32 -1.0, %v2657_v18  ;;  %4250 = vst [vmem:[#allocation21_spill] sm:$0xff] %v3440_v30  ;;  %v813_v18 = vmul.f32 1.442695, %v3417_v12  ;;  %v823_v14 = vmul.f32 1.442695, %v3434_v51  ;;  %v2659_v19 = vpop.eup %2658  ;;  %2672 = vpow2.f32 %v805_v39 }
 0x126   : > { %v3427_v46 = vpop.f32.mrb[24].mxu0  ;;  %v3429_v63 = vpop.f32.mrb[24].mxu1  ;;  %4251 = vst [vmem:[#allocation22_spill] sm:$0xff] %v3449_v62  ;;  %4252 = vst [vmem:[#allocation23_spill] sm:$0xff] %v3451_v61  ;;  %v3455_v10 = vadd.f32 %v3259_v50, %v3356_v7  ;;  %v874_v30 = vmul.f32 1.6732632, %v2371_v2  ;;  %v3461_v16 = vadd.f32 %v3283_v22, %v3376_v37  ;;  %v907_v2 = vsel %vm747_vm4, %v3281_v40, %v875_v34 }
 0x127   : > { %v3436_v26 = vpop.f32.mrb[25].mxu0  ;;  %v3438_v0 = vpop.f32.mrb[25].mxu1  ;;  %v877_v32 = vmul.f32 1.6732632, %v2374_v41  ;;  %2674 = vpow2.f32 %v823_v14  ;;  %v3465_v21 = vmul.f32 1.050701, %v904_v6 }
 0x128   : > { %v2661_v38 = vpop.eup %2660  ;;  %2676 = vpow2.f32 %v809_v43  ;;  %v2373_v41 = vadd.f32 -1.0, %v2659_v19  ;;  %vm748_vm6 = vcmp.gt.f32.partialorder %v3308_v49, 0.0  ;;  %vm751_vm7 = vcmp.gt.f32.partialorder %v3351_v17, 0.0 }
 0x129   : > { %v2663_v8 = vpop.eup %2662  ;;  %4253 = vst [vmem:[#allocation24_spill] sm:$0xff] %v3465_v21  ;;  %v2376_v39 = vadd.f32 -1.0, %v2661_v38  ;;  %2678 = vpow2.f32 %v813_v18  ;;  %v817_v38 = vmul.f32 1.442695, %v3455_v10  ;;  %v906_v61 = vsel %vm746_vm3, %v3267_v4, %v874_v30 }
 0x12a   : > { %v3457_v15 = vpop.f32.mrb[26].mxu0  ;;  %v3463_v60 = vpop.f32.mrb[26].mxu1  ;;  %v2378_v22 = vadd.f32 -1.0, %v2663_v8  ;;  %v909_v40 = vsel %vm749_vm5, %v3296_v5, %v877_v32  ;;  %v821_v34 = vmul.f32 1.442695, %v3461_v16  ;;  %vm753_vm8 = vcmp.gt.f32.partialorder %v3354_v3, 0.0 }
 0x12b   : > { %v3468_v50 = vpop.f32.mrb[27].mxu0  ;;  %v3470_v7 = vpop.f32.mrb[27].mxu1  ;;  %v879_v6 = vmul.f32 1.6732632, %v2376_v39  ;;  %v3489_v39 = vmul.f32 1.050701, %v907_v2  ;;  %2680 = vpow2.f32 %v817_v38 }
 0x12c   : > { %4254 = vst [vmem:[#allocation25_spill] sm:$0xff] %v3468_v50  ;;  %4255 = vst [vmem:[#allocation26_spill] sm:$0xff] %v3470_v7  ;;  %v2665_v14 = vpop.eup %2664  ;;  %v881_v19 = vmul.f32 1.6732632, %v2378_v22  ;;  %v876_v30 = vmul.f32 1.6732632, %v2373_v41  ;;  %2682 = vpow2.f32 %v821_v34  ;;  %v3527_v34 = vadd.f32 %v3285_v24, %v3376_v37 }
 0x12d   : > { %v2667_v43 = vpop.eup %2666  ;;  %4258 = vst [vmem:[#allocation29_spill] sm:$0xff] %v3489_v39  ;;  %v911_v62 = vsel %vm751_vm7, %v3351_v17, %v879_v6  ;;  %vm755_vm9 = vcmp.gt.f32.partialorder %v3382_v31, 0.0  ;;  %vm757_vm10 = vcmp.gt.f32.partialorder %v3391_v44, 0.0  ;;  %vm759_vm11 = vcmp.gt.f32.partialorder %v3402_v25, 0.0 }
 0x12e   : > { %v3485_v18 = vpop.f32.mrb[28].mxu0  ;;  %v3487_v8 = vpop.f32.mrb[28].mxu1  ;;  %v2380_v7 = vadd.f32 -1.0, %v2667_v43  ;;  %v3495_v50 = vmul.f32 1.050701, %v911_v62  ;;  %v913_v5 = vsel %vm753_vm8, %v3354_v3, %v881_v19  ;;  %vm761_vm12 = vcmp.gt.f32.partialorder %v3434_v51, 0.0 }
 0x12f   : > { %4256 = vst [vmem:[#allocation27_spill] sm:$0xff] %v3485_v18  ;;  %4257 = vst [vmem:[#allocation28_spill] sm:$0xff] %v3487_v8  ;;  %v2669_v21 = vpop.eup %2668  ;;  %v3493_v4 = vpop.f32.mrb[29].mxu0  ;;  %v3500_v18 = vmul.f32 1.050701, %v909_v40  ;;  %v2375_v8 = vadd.f32 -1.0, %v2665_v14  ;;  %v3538_v24 = vadd.f32 %v3310_v11, %v3155_v55 }
 0x130   : > { %4259 = vst [vmem:[#allocation30_spill] sm:$0xff] %v3495_v50  ;;  %v2382_v32 = vadd.f32 -1.0, %v2669_v21  ;;  %v3498_v22 = vpop.f32.mrb[29].mxu1  ;;  %v3502_v2 = vmul.f32 1.050701, %v913_v5  ;;  %v2671_v6 = vpop.eup %2670  ;;  %vm750_vm13 = vcmp.gt.f32.partialorder %v3346_v13, 0.0 }
 0x131   : > { %4260 = vst [vmem:[#allocation31_spill] sm:$0xff] %v3500_v18  ;;  %v3506_v43 = vmul.f32 1.050701, %v906_v61  ;;  %v883_v41 = vmul.f32 1.6732632, %v2380_v7  ;;  %v2673_v40 = vpop.eup %2672  ;;  %v3519_v61 = vadd.f32 %v3300_v1, %v3155_v55  ;;  %v2384_v7 = vadd.f32 -1.0, %v2671_v6 }
 0x132   : > { %4261 = vst [vmem:[#allocation32_spill] sm:$0xff] %v3502_v2  ;;  %v3504_v17 = vpop.f32.mrb[30].mxu0  ;;  %v3510_v3 = vpop.f32.mrb[30].mxu1  ;;  %v885_v38 = vmul.f32 1.6732632, %v2382_v32  ;;  %v908_v32 = vsel %vm748_vm6, %v3308_v49, %v876_v30  ;;  %v2377_v2 = vadd.f32 -1.0, %v2673_v40 }
 0x133   : > { %v3512_v21 = vpop.f32.mrb[31].mxu0  ;;  %v3521_v19 = vpop.f32.mrb[31].mxu1  ;;  %v878_v62 = vmul.f32 1.6732632, %v2375_v8  ;;  %v915_v39 = vsel %vm755_vm9, %v3382_v31, %v883_v41  ;;  %v887_v6 = vmul.f32 1.6732632, %v2384_v7  ;;  %v3544_v8 = vadd.f32 %v3312_v28, %v3155_v55 }
 0x134   : > { %v2675_v5 = vpop.eup %2674  ;;  %v917_v37 = vsel %vm757_vm10, %v3391_v44, %v885_v38  ;;  %v1321_v49 = vmul.f32 1.442695, %v3519_v61  ;;  %v825_v31 = vmul.f32 1.442695, %v3527_v34  ;;  %v1325_v41 = vmul.f32 1.442695, %v3538_v24 }
 0x135   : > { %v2677_v14 = vpop.eup %2676  ;;  %v2386_v1 = vadd.f32 -1.0, %v2675_v5  ;;  %v919_v40 = vsel %vm759_vm11, %v3402_v25, %v887_v6  ;;  %vm752_vm14 = vcmp.gt.f32.partialorder %v3387_v29, 0.0  ;;  %vm754_vm15 = vcmp.gt.f32.partialorder %v3409_v42, 0.0 }
 0x136   : > { %v2679_v18 = vpop.eup %2678  ;;  %v2379_v30 = vadd.f32 -1.0, %v2677_v14  ;;  %v3554_v11 = vmul.f32 1.050701, %v915_v39  ;;  %v3556_v28 = vmul.f32 1.050701, %v919_v40  ;;  %vm756_vm0 = vcmp.gt.f32.partialorder %v3417_v12, 0.0 }
 0x137   : > { %v889_v50 = vmul.f32 1.6732632, %v2386_v1  ;;  %v2381_v44 = vadd.f32 -1.0, %v2679_v18  ;;  %v3561_v25 = vmul.f32 1.050701, %v917_v37  ;;  %2684 = vpow2.f32 %v1321_v49  ;;  %v2681_v7 = vpop.eup %2680 }
 0x138   : > { %v1323_v5 = vmul.f32 1.442695, %v3544_v8  ;;  %v880_v1 = vmul.f32 1.6732632, %v2377_v2  ;;  %2686 = vpow2.f32 %v1325_v41  ;;  %v3571_v39 = vadd.f32 %v3325_v53, %v3155_v55 }
 0x139   : > { %v921_v14 = vsel %vm761_vm12, %v3434_v51, %v889_v50  ;;  %v2683_v51 = vpop.eup %2682  ;;  %v882_v50 = vmul.f32 1.6732632, %v2379_v30  ;;  %v3577_v37 = vadd.f32 %v3327_v23, %v3159_v57  ;;  %v884_v49 = vmul.f32 1.6732632, %v2381_v44 }
 0x13a   : > { %v3564_v38 = vmul.f32 1.050701, %v921_v14  ;;  %2688 = vpow2.f32 %v1323_v5  ;;  %v1327_v2 = vmul.f32 1.442695, %v3571_v39  ;;  %v3582_v40 = vadd.f32 %v3334_v35, %v3159_v57 }
 0x13b   : > { %v3586_v55 = vadd.f32 %v3336_v45, %v3159_v57  ;;  %2690 = vpow2.f32 %v825_v31  ;;  %v1329_v53 = vmul.f32 1.442695, %v3577_v37  ;;  %v3591_v30 = vadd.f32 %v3348_v48, %v3159_v57 }
 0x13c   : > { %v3595_v23 = vadd.f32 %v3361_v54, %v3157_v56  ;;  %v2383_v41 = vadd.f32 -1.0, %v2681_v7  ;;  %v2385_v44 = vadd.f32 -1.0, %v2683_v51  ;;  %2692 = vpow2.f32 %v1327_v2 }
 0x13d   : > { %v1333_v35 = vmul.f32 1.442695, %v3582_v40  ;;  %vm758_vm1 = vcmp.gt.f32.partialorder %v3455_v10, 0.0  ;;  %vm760_vm2 = vcmp.gt.f32.partialorder %v3461_v16, 0.0  ;;  %2694 = vpow2.f32 %v1329_v53 }
 0x13e   : > { %v1331_v45 = vmul.f32 1.442695, %v3586_v55  ;;  %v3601_v31 = vmul.f32 1.050701, %v908_v32  ;;  %v1335_v57 = vmul.f32 1.442695, %v3591_v30  ;;  %v910_v54 = vsel %vm750_vm13, %v3346_v13, %v878_v62 }
 0x13f   : > { %2696 = vpow2.f32 %v1333_v35  ;;  %v1337_v48 = vmul.f32 1.442695, %v3595_v23  ;;  %v912_v14 = vsel %vm752_vm14, %v3387_v29, %v880_v1  ;;  %v914_v5 = vsel %vm754_vm15, %v3409_v42, %v882_v50 }
 0x140   : > { %v3616_v32 = vadd.f32 %v3363_v47, %v3157_v56  ;;  %v916_v7 = vsel %vm756_vm0, %v3417_v12, %v884_v49  ;;  %v886_v51 = vmul.f32 1.6732632, %v2383_v41  ;;  %v888_v2 = vmul.f32 1.6732632, %v2385_v44 }
 0x141   : > { %2698 = vpow2.f32 %v1331_v45  ;;  %v2685_v13 = vpop.eup %2684  ;;  %v3624_v29 = vadd.f32 %v3378_v36, %v3157_v56  ;;  %v3628_v42 = vadd.f32 %v3393_v52, %v3161_v58  ;;  %vm1289_vm3 = vcmp.gt.f32.partialorder %v3519_v61, 0.0 }
 0x142   : > { %2700 = vpow2.f32 %v1337_v48  ;;  %v1341_v62 = vmul.f32 1.442695, %v3616_v32  ;;  %v2687_v47 = vpop.eup %2686  ;;  %v2408_v1 = vadd.f32 -1.0, %v2685_v13  ;;  %v3633_v12 = vadd.f32 %v3395_v27, %v3161_v58 }
 0x143   : > { %2702 = vpow2.f32 %v1335_v57  ;;  %v3635_v49 = vmul.f32 1.050701, %v910_v54  ;;  %v3637_v53 = vmul.f32 1.050701, %v912_v14  ;;  %v2410_v36 = vadd.f32 -1.0, %v2687_v47 }
 0x144   : > { %v2689_v50 = vpop.eup %2688  ;;  %2704 = vpow2.f32 %v1341_v62  ;;  %v3639_v41 = vmul.f32 1.050701, %v914_v5  ;;  %v3641_v52 = vmul.f32 1.050701, %v916_v7  ;;  %v918_v44 = vsel %vm758_vm1, %v3455_v10, %v886_v51 }
 0x145   : > { %v3648_v35 = vadd.f32 %v3384_v9, %v3157_v56  ;;  %v2691_v27 = vpop.eup %2690  ;;  %v920_v45 = vsel %vm760_vm2, %v3461_v16, %v888_v2  ;;  %v1417_v57 = vmul.f32 1.6732632, %v2408_v1  ;;  %v1339_v48 = vmul.f32 1.442695, %v3624_v29 }
 0x146   : > { %v1345_v54 = vmul.f32 1.442695, %v3628_v42  ;;  %v2693_v14 = vpop.eup %2692  ;;  %v1419_v5 = vmul.f32 1.6732632, %v2410_v36  ;;  %v2409_v7 = vadd.f32 -1.0, %v2689_v50  ;;  %v3658_v10 = vadd.f32 %v3404_v33, %v3161_v58 }
 0x147   : > { %v1349_v13 = vmul.f32 1.442695, %v3633_v12  ;;  %v2695_v56 = vpop.eup %2694  ;;  %v3660_v9 = vmul.f32 1.050701, %v918_v44  ;;  %vm1291_vm4 = vcmp.gt.f32.partialorder %v3538_v24, 0.0  ;;  %vm1290_vm5 = vcmp.gt.f32.partialorder %v3544_v8, 0.0 }
 0x148   : > { %2706 = vpow2.f32 %v1345_v54  ;;  %v3664_v51 = vmul.f32 1.050701, %v920_v45  ;;  %v2412_v2 = vadd.f32 -1.0, %v2695_v56  ;;  %v1343_v62 = vmul.f32 1.442695, %v3648_v35 }
 0x149   : > { %v2697_v16 = vpop.eup %2696  ;;  %2708 = vpow2.f32 %v1349_v13  ;;  %v1449_v33 = vsel %vm1289_vm3, %v3519_v61, %v1417_v57  ;;  %vm1293_vm6 = vcmp.gt.f32.partialorder %v3577_v37, 0.0  ;;  %v1451_v50 = vsel %vm1291_vm4, %v3538_v24, %v1419_v5 }
 0x14a   : > { %v2414_v47 = vadd.f32 -1.0, %v2697_v16  ;;  %2710 = vpow2.f32 %v1339_v48  ;;  %v1418_v36 = vmul.f32 1.6732632, %v2409_v7  ;;  %vm1292_vm7 = vcmp.gt.f32.partialorder %v3571_v39, 0.0 }
 0x14b   : > { %v2699_v1 = vpop.eup %2698  ;;  %v1421_v44 = vmul.f32 1.6732632, %v2412_v2  ;;  %v1347_v45 = vmul.f32 1.442695, %v3658_v10  ;;  %v2387_v56 = vadd.f32 -1.0, %v2691_v27  ;;  %v2411_v13 = vadd.f32 -1.0, %v2693_v14 }
 0x14c   : > { %v2701_v54 = vpop.eup %2700  ;;  %vm1295_vm8 = vcmp.gt.f32.partialorder %v3582_v40, 0.0  ;;  %v1423_v6 = vmul.f32 1.6732632, %v2414_v47  ;;  %v3675_v57 = vmul.f32 1.050701, %v1449_v33  ;;  %2712 = vpow2.f32 %v1343_v62 }
 0x14d   : > { %v2703_v61 = vpop.eup %2702  ;;  %v1453_v48 = vsel %vm1293_vm6, %v3577_v37, %v1421_v44  ;;  %v2416_v24 = vadd.f32 -1.0, %v2701_v54  ;;  %v3680_v7 = vmul.f32 1.050701, %v1451_v50  ;;  %2714 = vpow2.f32 %v1347_v45 }
 0x14e   : > { %v2705_v5 = vpop.eup %2704  ;;  %v3682_v16 = vmul.f32 1.050701, %v1453_v48  ;;  %v1455_v27 = vsel %vm1295_vm8, %v3582_v40, %v1423_v6  ;;  %v1450_v14 = vsel %vm1290_vm5, %v3544_v8, %v1418_v36  ;;  %v3692_v37 = vadd.f32 %v3406_v20, %v3161_v58 }
 0x14f   : > { %v3688_v2 = vmul.f32 1.050701, %v1455_v27  ;;  %v2418_v33 = vadd.f32 -1.0, %v2705_v5  ;;  %v1420_v62 = vmul.f32 1.6732632, %v2411_v13  ;;  %vm1294_vm9 = vcmp.gt.f32.partialorder %v3586_v55, 0.0 }
 0x150   : > { %v2482_v47 = vpack.c.bf16 %v3682_v16, %v3675_v57  ;;  %v2413_v50 = vadd.f32 -1.0, %v2699_v1  ;;  %v2415_v6 = vadd.f32 -1.0, %v2703_v61  ;;  %vm1297_vm10 = vcmp.gt.f32.partialorder %v3595_v23, 0.0 }
 0x151   : > { %v1425_v8 = vmul.f32 1.6732632, %v2416_v24  ;;  %v3702_v36 = vadd.f32 %v3427_v46, %v3163_v59  ;;  %v890_v20 = vmul.f32 1.6732632, %v2387_v56  ;;  %vm1299_vm11 = vcmp.gt.f32.partialorder %v3616_v32, 0.0 }
 0x152   : > { %v2707_v58 = vpop.eup %2706  ;;  %v1427_v44 = vmul.f32 1.6732632, %v2418_v33  ;;  %vm1301_vm12 = vcmp.gt.f32.partialorder %v3628_v42, 0.0  ;;  %v3706_v1 = vmul.f32 1.050701, %v1450_v14  ;;  %vm1303_vm13 = vcmp.gt.f32.partialorder %v3633_v12, 0.0 }
 0x153   : > { %v2709_v45 = vpop.eup %2708  ;;  %v2420_v54 = vadd.f32 -1.0, %v2707_v58  ;;  %v1351_v13 = vmul.f32 1.442695, %v3692_v37  ;;  %v1452_v46 = vsel %vm1292_vm7, %v3571_v39, %v1420_v62  ;;  %v1422_v48 = vmul.f32 1.6732632, %v2413_v50 }
 0x154   : > { %v2711_v61 = vpop.eup %2710  ;;  %vm1296_vm14 = vcmp.gt.f32.partialorder %v3591_v30, 0.0  ;;  %v1424_v56 = vmul.f32 1.6732632, %v2415_v6  ;;  %v2422_v24 = vadd.f32 -1.0, %v2709_v45  ;;  %vm762_vm15 = vcmp.gt.f32.partialorder %v3527_v34, 0.0 }
 0x155   : > { %v1457_v5 = vsel %vm1297_vm10, %v3595_v23, %v1425_v8  ;;  %v1429_v27 = vmul.f32 1.6732632, %v2420_v54  ;;  %2716 = vpow2.f32 %v1351_v13  ;;  %v1353_v14 = vmul.f32 1.442695, %v3702_v36 }
 0x156   : > { %v1459_v33 = vsel %vm1299_vm11, %v3616_v32, %v1427_v44  ;;  %v1431_v39 = vmul.f32 1.6732632, %v2422_v24  ;;  %v3724_v62 = vadd.f32 %v3429_v63, %v3163_v59  ;;  %v3728_v50 = vadd.f32 %v3436_v26, %v3163_v59  ;;  %v2713_v6 = vpop.eup %2712  ;;  %v4262_v24 = vld [vmem:[#allocation7_spill] sm:$0xff] }
 0x157   : > { %v2417_v58 = vadd.f32 -1.0, %v2711_v61  ;;  %v1461_v23 = vsel %vm1301_vm12, %v3628_v42, %v1429_v27  ;;  %2718 = vpow2.f32 %v1353_v14  ;;  %v3735_v8 = vadd.f32 %v3438_v0, %v3163_v59  ;;  %v2715_v32 = vpop.eup %2714  ;;  %v4263_v14 = vld [vmem:[#allocation25_spill] sm:$0xff] }
 0x158   : > { %v3737_v44 = vmul.f32 1.050701, %v1457_v5  ;;  %vm1298_vm0 = vcmp.gt.f32.partialorder %v3624_v29, 0.0  ;;  %v3740_v63 = vmul.f32 1.050701, %v1461_v23  ;;  %v1463_v26 = vsel %vm1303_vm13, %v3633_v12, %v1431_v39  ;;  %v4264_v39 = vld [vmem:[#allocation26_spill] sm:$0xff] }
 0x159   : > { %v1357_v45 = vmul.f32 1.442695, %v3724_v62  ;;  %v1454_v42 = vsel %vm1294_vm9, %v3586_v55, %v1422_v48  ;;  %v3749_v54 = vmul.f32 1.050701, %v1459_v33  ;;  %vm1300_vm1 = vcmp.gt.f32.partialorder %v3648_v35, 0.0 }
 0x15a   : > { %v3752_v59 = vmul.f32 1.050701, %v1463_v26  ;;  %v1355_v0 = vmul.f32 1.442695, %v3728_v50  ;;  %v2419_v13 = vadd.f32 -1.0, %v2713_v6  ;;  %vm1302_vm2 = vcmp.gt.f32.partialorder %v3658_v10, 0.0 }
 0x15b   : > { %2720 = vpow2.f32 %v1357_v45  ;;  %v1359_v12 = vmul.f32 1.442695, %v3735_v8  ;;  %v2421_v48 = vadd.f32 -1.0, %v2715_v32  ;;  %v3763_v5 = vadd.f32 %v3457_v15, %v4262_v24  ;;  %v4265_v26 = vld [vmem:[#allocation8_spill] sm:$0xff]  ;;  %v4266_v45 = vld [vmem:[#allocation27_spill] sm:$0xff] }
 0x15c   : > { %2722 = vpow2.f32 %v1355_v0  ;;  %v3767_v27 = vadd.f32 %v3463_v60, %v4262_v24  ;;  %v3771_v33 = vadd.f32 %v4263_v14, %v4262_v24  ;;  %v3775_v6 = vadd.f32 %v4264_v39, %v4262_v24 }
 0x15d   : > { %2724 = vpow2.f32 %v1359_v12  ;;  %v1456_v23 = vsel %vm1296_vm14, %v3591_v30, %v1424_v56  ;;  %v1426_v32 = vmul.f32 1.6732632, %v2417_v58  ;;  %v1361_v15 = vmul.f32 1.442695, %v3763_v5 }
 0x15e   : > { %v3783_v0 = vadd.f32 %v4266_v45, %v4265_v26  ;;  %v3788_v60 = vsel %vm762_vm15, %v3527_v34, %v890_v20  ;;  %v3790_v12 = vmul.f32 1.050701, %v1452_v46  ;;  %v1428_v24 = vmul.f32 1.6732632, %v2419_v13  ;;  %v4267_v46 = vld [vmem:[#allocation28_spill] sm:$0xff] }
 0x15f   : > { %v1365_v14 = vmul.f32 1.442695, %v3767_v27  ;;  %v2717_v39 = vpop.eup %2716  ;;  %v1430_v18 = vmul.f32 1.6732632, %v2421_v48  ;;  %2726 = vpow2.f32 %v1361_v15  ;;  %v1363_v30 = vmul.f32 1.442695, %v3771_v33 }
 0x160   : > { %v1367_v56 = vmul.f32 1.442695, %v3775_v6  ;;  %v1486_v58 = vmul.f32 1.050701, %v1454_v42  ;;  %v3795_v45 = vmul.f32 1.050701, %v1456_v23  ;;  %v1458_v20 = vsel %vm1298_vm0, %v3624_v29, %v1426_v32 }
 0x161   : > { %2728 = vpow2.f32 %v1365_v14  ;;  %v1369_v55 = vmul.f32 1.442695, %v3783_v0  ;;  %v2719_v34 = vpop.eup %2718  ;;  %vm1304_vm3 = vcmp.gt.f32.partialorder %v3692_v37, 0.0  ;;  %v3804_v13 = vadd.f32 %v4267_v46, %v4265_v26 }
 0x162   : > { %2730 = vpow2.f32 %v1363_v30  ;;  %v3808_v42 = vadd.f32 %v3493_v4, %v4265_v26  ;;  %v1460_v48 = vsel %vm1300_vm1, %v3648_v35, %v1428_v24  ;;  %v2423_v23 = vadd.f32 -1.0, %v2717_v39  ;;  %v4268_v24 = vld [vmem:[#allocation9_spill] sm:$0xff] }
 0x163   : > { %v2424_v15 = vadd.f32 -1.0, %v2719_v34  ;;  %2732 = vpow2.f32 %v1367_v56  ;;  %v1462_v29 = vsel %vm1302_vm2, %v3658_v10, %v1430_v18  ;;  %v1373_v32 = vmul.f32 1.442695, %v3804_v13 }
 0x164   : > { %2734 = vpow2.f32 %v1369_v55  ;;  %v3819_v14 = vadd.f32 %v3498_v22, %v4265_v26  ;;  %v3821_v30 = vmul.f32 1.050701, %v1458_v20  ;;  %vm1305_vm4 = vcmp.gt.f32.partialorder %v3702_v36, 0.0 }
 0x165   : > { %v2721_v4 = vpop.eup %2720  ;;  %v1433_v35 = vmul.f32 1.6732632, %v2424_v15  ;;  %v3826_v39 = vadd.f32 %v3504_v17, %v4268_v24  ;;  %v3828_v34 = vmul.f32 1.050701, %v1460_v48  ;;  %vm1307_vm5 = vcmp.gt.f32.partialorder %v3724_v62, 0.0 }
 0x166   : > { %v2723_v56 = vpop.eup %2722  ;;  %v2426_v18 = vadd.f32 -1.0, %v2721_v4  ;;  %v1371_v10 = vmul.f32 1.442695, %v3808_v42  ;;  %v3832_v55 = vmul.f32 1.050701, %v1462_v29  ;;  %vm1309_vm6 = vcmp.gt.f32.partialorder %v3763_v5, 0.0 }
 0x167   : > { %v2725_v22 = vpop.eup %2724  ;;  %v1432_v26 = vmul.f32 1.6732632, %v2423_v23  ;;  %vm1311_vm7 = vcmp.gt.f32.partialorder %v3767_v27, 0.0  ;;  %vm1306_vm8 = vcmp.gt.f32.partialorder %v3728_v50, 0.0  ;;  %v2425_v17 = vadd.f32 -1.0, %v2723_v56 }
 0x168   : > { %vm1310_vm9 = vcmp.gt.f32.partialorder %v3771_v33, 0.0  ;;  %2736 = vpow2.f32 %v1373_v32  ;;  %v1375_v20 = vmul.f32 1.442695, %v3819_v14  ;;  %v1465_v46 = vsel %vm1305_vm4, %v3702_v36, %v1433_v35 }
 0x169   : > { %v1435_v48 = vmul.f32 1.6732632, %v2426_v18  ;;  %v2427_v15 = vadd.f32 -1.0, %v2725_v22  ;;  %v1377_v23 = vmul.f32 1.442695, %v3826_v39  ;;  %v2727_v29 = vpop.eup %2726  ;;  %vm1312_vm10 = vcmp.gt.f32.partialorder %v3775_v6, 0.0 }
 0x16a   : > { %2738 = vpow2.f32 %v1371_v10  ;;  %v3846_v4 = vadd.f32 %v3510_v3, %v4268_v24  ;;  %v2480_v32 = vpack.c.bf16 %v1486_v58, %v3706_v1  ;;  %v1464_v61 = vsel %vm1304_vm3, %v3692_v37, %v1432_v26 }
 0x16b   : > { %v2729_v56 = vpop.eup %2728  ;;  %v2428_v36 = vadd.f32 -1.0, %v2727_v29  ;;  %2740 = vpow2.f32 %v1377_v23  ;;  %v3854_v35 = vadd.f32 %v3512_v21, %v4268_v24  ;;  %v3856_v22 = vmul.f32 1.050701, %v1465_v46 }
 0x16c   : > { %v2731_v18 = vpop.eup %2730  ;;  %v1434_v10 = vmul.f32 1.6732632, %v2425_v17  ;;  %v2430_v40 = vadd.f32 -1.0, %v2729_v56  ;;  %2742 = vpow2.f32 %v1375_v20  ;;  %2481 = vmatprep.subr.bf16.mxu0 %v2480_v32  ;;  %v1467_v1 = vsel %vm1307_vm5, %v3724_v62, %v1435_v48 }
 0x16d   : > { %v2733_v3 = vpop.eup %2732  ;;  %v1436_v58 = vmul.f32 1.6732632, %v2427_v15  ;;  %v1437_v37 = vmul.f32 1.6732632, %v2428_v36  ;;  %v2429_v26 = vadd.f32 -1.0, %v2731_v18  ;;  %2483 = vmatpush1.bf16.msra.mxu0 %v2482_v47  ;;  %v3867_v20 = vadd.f32 %v3521_v19, %v4268_v24 }
 0x16e   : > { %v2735_v21 = vpop.eup %2734  ;;  %v1439_v23 = vmul.f32 1.6732632, %v2430_v40  ;;  %v2431_v46 = vadd.f32 -1.0, %v2733_v3  ;;  %v1381_v17 = vmul.f32 1.442695, %v3846_v4  ;;  %v1466_v19 = vsel %vm1306_vm8, %v3728_v50, %v1434_v10 }
 0x16f   : > { %v1469_v62 = vsel %vm1309_vm6, %v3763_v5, %v1437_v37  ;;  %v1438_v48 = vmul.f32 1.6732632, %v2429_v26  ;;  %v2432_v15 = vadd.f32 -1.0, %v2735_v21  ;;  %v1379_v29 = vmul.f32 1.442695, %v3854_v35 }
 0x170   : > { %v1501_v32 = vmul.f32 1.050701, %v1469_v62  ;;  %v1471_v57 = vsel %vm1311_vm7, %v3767_v27, %v1439_v23  ;;  %v1440_v16 = vmul.f32 1.6732632, %v2431_v46  ;;  %2744 = vpow2.f32 %v1381_v17 }
 0x171   : > { %v3876_v47 = vmul.f32 1.050701, %v1467_v1  ;;  %v3881_v40 = vmul.f32 1.050701, %v1471_v57  ;;  %v1470_v5 = vsel %vm1310_vm9, %v3771_v33, %v1438_v48  ;;  %vm1308_vm11 = vcmp.gt.f32.partialorder %v3735_v8, 0.0 }
 0x172   : > { %v2737_v24 = vpop.eup %2736  ;;  %v2490_v56 = vpack.c.bf16 %v1501_v32, %v3856_v22  ;;  %v1472_v27 = vsel %vm1312_vm10, %v3775_v6, %v1440_v16  ;;  %v1441_v36 = vmul.f32 1.6732632, %v2432_v15  ;;  %v1496_v18 = vmul.f32 1.050701, %v1464_v61  ;;  %v4272_v15 = vld [vmem:[#allocation20_spill] sm:$0xff]  ;;  %v4274_v16 = vld [vmem:[#allocation21_spill] sm:$0xff] }
 0x173   : > { %v1468_v3 = vsel %vm1308_vm11, %v3735_v8, %v1436_v58  ;;  %v2506_v50 = vpack.c.bf16 %v3881_v40, %v3876_v47  ;;  %v1502_v10 = vmul.f32 1.050701, %v1470_v5  ;;  %v1498_v37 = vmul.f32 1.050701, %v1466_v19  ;;  %v4275_v19 = vld [vmem:[#allocation22_spill] sm:$0xff]  ;;  %v4276_v40 = vld [vmem:[#allocation24_spill] sm:$0xff] }
 0x174   : > { %v2739_v1 = vpop.eup %2738  ;;  %v1504_v33 = vmul.f32 1.050701, %v1472_v27  ;;  %vm1313_vm12 = vcmp.gt.f32.partialorder %v3783_v0, 0.0  ;;  %2746 = vpow2.f32 %v1379_v29  ;;  %v2434_v22 = vadd.f32 -1.0, %v2737_v24 }
 0x175   : > { %v2741_v26 = vpop.eup %2740  ;;  %v1383_v21 = vmul.f32 1.442695, %v3867_v20  ;;  %v2496_v6 = vpack.c.bf16 %v3795_v45, %v3790_v12  ;;  %v2484_v8 = vpack.c.bf16 %v3832_v55, %v3821_v30  ;;  %v3901_v58 = vmul.f32 1.050701, %v3788_v60  ;;  %v4271_v55 = vld [vmem:[#allocation18_spill] sm:$0xff] }
 0x176   : > { %v2743_v61 = vpop.eup %2742  ;;  %v1500_v23 = vmul.f32 1.050701, %v1468_v3  ;;  %v1473_v46 = vsel %vm1313_vm12, %v3783_v0, %v1441_v36  ;;  %v2436_v17 = vadd.f32 -1.0, %v2741_v26  ;;  %vm1317_vm13 = vcmp.gt.f32.partialorder %v3826_v39, 0.0 }
 0x177   : > { %2748 = vpow2.f32 %v1383_v21  ;;  %2497 = vmatprep.subr.bf16.mxu1 %v2496_v6  ;;  %2485 = vmatprep.subr.bf16.mxu0 %v2484_v8  ;;  %v2500_v62 = vpack.c.bf16 %v1496_v18, %v3828_v34  ;;  %v2488_v48 = vpack.c.bf16 %v1502_v10, %v1498_v37  ;;  %v2433_v12 = vadd.f32 -1.0, %v2739_v1  ;;  %v4273_v34 = vld [vmem:[#allocation19_spill] sm:$0xff] }
 0x178   : > { %v1445_v45 = vmul.f32 1.6732632, %v2436_v17  ;;  %v4269_v30 = vpack.c.bf16 %v3688_v2, %v3680_v7  ;;  %v4270_v60 = vpack.c.bf16 %v3740_v63, %v3737_v44  ;;  %v2504_v0 = vpack.c.bf16 %v1504_v33, %v1500_v23  ;;  %v4277_v44 = vld [vmem:[#allocation23_spill] sm:$0xff] }
 0x179   : > { %v2512_v29 = vpack.c.bf16 %v4272_v15, %v4271_v55  ;;  %v1505_v32 = vmul.f32 1.050701, %v1473_v46  ;;  %v1443_v57 = vmul.f32 1.6732632, %v2434_v22  ;;  %v2528_v47 = vpack.c.bf16 %v4274_v16, %v4273_v34  ;;  %v1518_v15 = vld [vmem:[%s4207_s7 + $0x8] sm:$0xff]  ;;  %v4286_v34 = vld [vmem:[#allocation15_spill] sm:$0xff] }
 0x17a   : > { %2499 = vmatpush1.bf16.msra.mxu1 %v4269_v30  ;;  %2487 = vmatpush1.bf16.msra.mxu0 %v4270_v60  ;;  %v2516_v5 = vpack.c.bf16 %v4276_v40, %v4275_v19  ;;  %v2745_v7 = vpop.eup %2744  ;;  %v1477_v2 = vsel %vm1317_vm13, %v3826_v39, %v1445_v45  ;;  %v2532_v63 = vpack.c.bf16 %v3506_v43, %v4277_v44  ;;  %vm1315_vm14 = vcmp.gt.f32.partialorder %v3804_v13, 0.0  ;;  %v4287_v16 = vld [vmem:[#allocation14_spill] sm:$0xff]  ;;  %v4289_v40 = vld [vmem:[#allocation17_spill] sm:$0xff] }
 0x17b   : > { %2501 = vmatprep.subr.bf16.mxu1 %v2500_v62  ;;  %2489 = vmatprep.subr.bf16.mxu0 %v2488_v48  ;;  %v2520_v24 = vpack.c.bf16 %v3637_v53, %v3601_v31  ;;  %v2536_v27 = vpack.c.bf16 %v3639_v41, %v3635_v49  ;;  %v1509_v36 = vmul.f32 1.050701, %v1477_v2  ;;  %v2438_v18 = vadd.f32 -1.0, %v2745_v7  ;;  %v1519_v19 = vld [vmem:[%s4207_s7 + $0x10] sm:$0xff]  ;;  %v4293_v44 = vld [vmem:[#allocation29_spill] sm:$0xff]  ;;  %v1520_v31 = vld [vmem:[%s4207_s7 + $0x18] sm:$0xff] }
 0x17c   : > { %v2524_v3 = vpack.c.bf16 %v3664_v51, %v3641_v52  ;;  %v2540_v10 = vpack.c.bf16 %v3901_v58, %v3660_v9  ;;  %v2435_v39 = vadd.f32 -1.0, %v2743_v61  ;;  %v4278_v43 = vpack.c.bf16 %v3752_v59, %v3749_v54  ;;  %v4292_v2 = vld [vmem:[#allocation30_spill] sm:$0xff]  ;;  %v4295_v49 = vld [vmem:[#allocation32_spill] sm:$0xff]  ;;  %v4296_v53 = vld [vmem:[#allocation31_spill] sm:$0xff] }
 0x17d   : > { %v1475_v1 = vsel %vm1315_vm14, %v3804_v13, %v1443_v57  ;;  %v1442_v37 = vmul.f32 1.6732632, %v2433_v12  ;;  %v2494_v33 = vpack.c.bf16 %v1509_v36, %v1505_v32  ;;  %v1447_v26 = vmul.f32 1.6732632, %v2438_v18  ;;  %v4283_v32 = vld [vmem:[#allocation13_spill] sm:$0xff] }
 0x17e   : > { %2503 = vmatpush1.bf16.msra.mxu1 %v4278_v43  ;;  %2491 = vmatpush1.bf16.msra.mxu0 %v2490_v56  ;;  %v2747_v22 = vpop.eup %2746  ;;  %vm1319_vm15 = vcmp.gt.f32.partialorder %v3846_v4, 0.0  ;;  %vm1314_vm0 = vcmp.gt.f32.partialorder %v3808_v42, 0.0  ;;  %v1507_v8 = vmul.f32 1.050701, %v1475_v1  ;;  %v1444_v61 = vmul.f32 1.6732632, %v2435_v39  ;;  %v1914_v43 = vpop.permute.xlu1 %1913 }
 0x17f   : > { %2505 = vmatprep.subr.bf16.mxu1 %v2504_v0  ;;  %v1479_v21 = vsel %vm1319_vm15, %v3846_v4, %v1447_v26  ;;  %v2437_v6 = vadd.f32 -1.0, %v2747_v22  ;;  %v1474_v59 = vsel %vm1314_vm0, %v3808_v42, %v1442_v37  ;;  %vm1318_vm1 = vcmp.gt.f32.partialorder %v3854_v35, 0.0  ;;  %v1517_v0 = vld [vmem:[%s4207_s7] sm:$0xff] }
 0x180   : > { %v1511_v23 = vmul.f32 1.050701, %v1479_v21  ;;  %vm1316_vm2 = vcmp.gt.f32.partialorder %v3819_v14, 0.0  ;;  %v1506_v62 = vmul.f32 1.050701, %v1474_v59  ;;  %vm1320_vm3 = vcmp.gt.f32.partialorder %v3867_v20, 0.0 }
 0x181   : > { %v2749_v54 = vpop.eup %2748  ;;  %v1446_v13 = vmul.f32 1.6732632, %v2437_v6  ;;  %v1476_v4 = vsel %vm1316_vm2, %v3819_v14, %v1444_v61  ;;  %vm1521_vm4 = vcmask 523264   ;;  %v4279_v14 = vld [vmem:[#allocation11_spill] sm:$0xff]  ;;  %v4282_v55 = vmov 0.0   ;;  %v1513_v52 = vld [vmem:[%s4206_s6] sm:$0xff] }
 0x182   : > { %2507 = vmatpush1.bf16.msra.mxu1 %v2506_v50  ;;  %v2510_v56 = vpack.c.bf16 %v1511_v23, %v1507_v8  ;;  %v2439_v46 = vadd.f32 -1.0, %v2749_v54  ;;  %v1508_v42 = vmul.f32 1.050701, %v1476_v4  ;;  %v4297_v41 = vpack.c.bf16 %v4295_v49, %v4296_v53 }
 0x183   : > { %v1478_v17 = vsel %vm1318_vm1, %v3854_v35, %v1446_v13  ;;  %v4280_v35 = vld [vmem:[#allocation10_spill] sm:$0xff]  ;;  %v4299_v51 = vpack.c.bf16 %v3564_v38, %v3561_v25  ;;  %v1516_v25 = vld [vmem:[%s4206_s6 + $0x18] sm:$0xff]  ;;  %v1909_v38 = vpop.permute.xlu0 %1908 }
 0x184   : > { %v1510_v48 = vmul.f32 1.050701, %v1478_v17  ;;  %v1448_v12 = vmul.f32 1.6732632, %v2439_v46 }
 0x186   : > { %v1480_v50 = vsel %vm1320_vm3, %v3867_v20, %v1448_v12  ;;  %v2492_v45 = vpack.c.bf16 %v1510_v48, %v1506_v62  ;;  %v4281_v20 = vpack.c.bf16 %v4279_v14, %v4280_v35  ;;  %vm2065_vm3 = vcmask 261120  }
 0x187   : > { %v1512_v30 = vmul.f32 1.050701, %v1480_v50  ;;  %v1919_v13 = vpop.permute.xlu0 %1918 }
 0x188   : > { %2493 = vmatprep.subr.bf16.mxu0 %v2492_v45 }
 0x189   : > { %v2508_v60 = vpack.c.bf16 %v1512_v30, %v1508_v42  ;;  %2495 = vmatpush1.bf16.msra.mxu0 %v2494_v33 }
 0x18a   : > { %2513 = vmatprep.subr.bf16.mxu0 %v2512_v29  ;;  %v4284_v29 = vld [vmem:[#allocation12_spill] sm:$0xff] }
 0x18b   : > { %2509 = vmatprep.subr.bf16.mxu1 %v2508_v60  ;;  %v4285_v57 = vpack.c.bf16 %v4283_v32, %v4284_v29 }
 0x18c   : > { %2511 = vmatpush1.bf16.msra.mxu1 %v2510_v56  ;;  %2440 = vmatmul.mubr.msk.f32.vlgmr.msra.gmra.mrb[32].mxu0 %vm1521_vm4, %v1517_v0 }
 0x18d   : > { %2529 = vmatprep.subr.bf16.mxu1 %v2528_v47  ;;  %2515 = vmatpush1.bf16.msra.mxu0 %v4281_v20  ;;  %v4288_v47 = vpack.c.bf16 %v4286_v34, %v4287_v16 }
 0x18e   : > { %2517 = vmatprep.subr.bf16.mxu0 %v2516_v5  ;;  %1604 = vmatprep.mubr.f32.mxu0 %v4282_v55  ;;  %v4290_v5 = vld [vmem:[#allocation16_spill] sm:$0xff] }
 0x18f   : > { %2444 = vmatmul.mubr.msk.f32.vlgmr.msra.gmra.mrb[32].mxu1 %vm1521_vm4, %v1517_v0  ;;  %v4291_v7 = vpack.c.bf16 %v4289_v40, %v4290_v5  ;;  %v4069_v0 = vpop.permute.xlu1 %1923 }
 0x190   : > { %2531 = vmatpush1.bf16.msra.mxu1 %v4285_v57  ;;  %1693 = vmatprep.mubr.f32.mxu1 %v4282_v55 }
 0x191   : > { %2533 = vmatprep.subr.bf16.mxu1 %v2532_v63  ;;  %2441 = vmatmul.mubr.msk.f32.gmra.mrb[34].mxu0 %vm1521_vm4, %v1518_v15  ;;  %v4294_v63 = vpack.c.bf16 %v4292_v2, %v4293_v44 }
 0x192   : > { %2519 = vmatpush1.bf16.msra.mxu0 %v4288_v47  ;;  %1610 = vmatprep.mubr.f32.mxu0 %v4282_v55 }
 0x193   : > { %2445 = vmatmul.mubr.msk.f32.gmra.mrb[34].mxu1 %vm1521_vm4, %v1518_v15  ;;  %2521 = vmatprep.subr.bf16.mxu0 %v2520_v24  ;;  %v4298_v24 = vpack.c.bf16 %v3556_v28, %v3554_v11  ;;  %v1514_v11 = vld [vmem:[%s4206_s6 + $0x8] sm:$0xff]  ;;  %v1515_v28 = vld [vmem:[%s4206_s6 + $0x10] sm:$0xff] }
 0x194   : > { %2535 = vmatpush1.bf16.msra.mxu1 %v4291_v7  ;;  %1699 = vmatprep.mubr.f32.mxu1 %v4282_v55 }
 0x195   : > { %2537 = vmatprep.subr.bf16.mxu1 %v2536_v27  ;;  %2442 = vmatmul.mubr.msk.f32.gmra.mrb[36].mxu0 %vm1521_vm4, %v1519_v19 }
 0x196   : > { %2523 = vmatpush1.bf16.msra.mxu0 %v4294_v63  ;;  %1616 = vmatprep.mubr.f32.mxu0 %v4282_v55 }
 0x197   : > { %2446 = vmatmul.mubr.msk.f32.gmra.mrb[36].mxu1 %vm1521_vm4, %v1519_v19  ;;  %2525 = vmatprep.subr.bf16.mxu0 %v2524_v3 }
 0x198   : > { %2539 = vmatpush1.bf16.msra.mxu1 %v4297_v41  ;;  %1705 = vmatprep.mubr.f32.mxu1 %v4282_v55 }
 0x199   : > { %2541 = vmatprep.subr.bf16.mxu1 %v2540_v10  ;;  %2443 = vmatmul.mubr.msk.f32.gmra.mrb[38].mxu0 %vm1521_vm4, %v1520_v31 }
 0x19a   : > { %2527 = vmatpush1.bf16.msra.mxu0 %v4298_v24  ;;  %1788 = vmatprep.mubr.f32.mxu0 %v4282_v55 }
 0x19b   : > { %2447 = vmatmul.mubr.msk.f32.gmra.mrb[38].mxu1 %vm1521_vm4, %v1520_v31 }
 0x19c   : > { %2543 = vmatpush1.bf16.msra.mxu1 %v4299_v51  ;;  %1877 = vmatprep.mubr.f32.mxu1 %v4282_v55 }
 0x19d   : > { %2448 = vmatmul.mubr.msk.f32.vlgmr.msra.gmra.mrb[32].mxu0 %vm1521_vm4, %v1513_v52 }
 0x19e   : > { %1794 = vmatprep.mubr.f32.mxu0 %v4282_v55 }
 0x19f   : > { %2452 = vmatmul.mubr.msk.f32.vlgmr.msra.gmra.mrb[32].mxu1 %vm1521_vm4, %v1513_v52 }
 0x1a0   : > { %1883 = vmatprep.mubr.f32.mxu1 %v4282_v55 }
 0x1a1   : > { %2449 = vmatmul.mubr.msk.f32.gmra.mrb[34].mxu0 %vm1521_vm4, %v1514_v11 }
 0x1a2   : > { %1800 = vmatprep.mubr.f32.mxu0 %v4282_v55 }
 0x1a3   : > { %2453 = vmatmul.mubr.msk.f32.gmra.mrb[34].mxu1 %vm1521_vm4, %v1514_v11 }
 0x1a4   : > { %1889 = vmatprep.mubr.f32.mxu1 %v4282_v55 }
 0x1a5   : > { %2450 = vmatmul.mubr.msk.f32.gmra.mrb[36].mxu0 %vm1521_vm4, %v1515_v28 }
 0x1a6   : > { %1806 = vmatprep.mubr.f32.mxu0 %v4282_v55 }
 0x1a7   : > { %2454 = vmatmul.mubr.msk.f32.gmra.mrb[36].mxu1 %vm1521_vm4, %v1515_v28 }
 0x1a8   : > { %1895 = vmatprep.mubr.f32.mxu1 %v4282_v55 }
 0x1a9   : > { %2451 = vmatmul.mubr.msk.f32.gmra.mrb[38].mxu0 %vm1521_vm4, %v1516_v25 }
 0x1aa   : > { %2133 = vmatprep.mubr.f32.mxu0 %v4282_v55 }
 0x1ab   : > { %2455 = vmatmul.mubr.msk.f32.gmra.mrb[38].mxu1 %vm1521_vm4, %v1516_v25 }
 0x1ac   : > { %2204 = vmatprep.mubr.f32.mxu1 %v4282_v55 }
 0x270   : > { %v1790_v9 = vpop.f32.mrb[32].mxu0 }
 0x271   : > { %v4038_v58 = vadd.f32 %v1909_v38, %v1790_v9  ;;  %v1792_v27 = vpop.f32.mrb[33].mxu0 }
 0x272   : > { %v1879_v36 = vpop.f32.mrb[32].mxu1  ;;  %v4040_v18 = vadd.f32 %v1909_v38, %v1792_v27 }
 0x273   : > { %v1958_v3 = vmul.f32 1.442695, %v4038_v58  ;;  %v4043_v10 = vadd.f32 %v1909_v38, %v1879_v36  ;;  %v1881_v39 = vpop.f32.mrb[33].mxu1  ;;  %vm1942_vm5 = vcmp.gt.f32.partialorder %v4038_v58, 0.0 }
 0x274   : > { %v1960_v1 = vmul.f32 1.442695, %v4040_v18  ;;  %v4046_v37 = vadd.f32 %v1909_v38, %v1881_v39  ;;  %v1796_v33 = vpop.f32.mrb[34].mxu0  ;;  %vm1943_vm7 = vcmp.gt.f32.partialorder %v4040_v18, 0.0 }
 0x275   : > { %2750 = vpow2.f32 %v1958_v3  ;;  %v1962_v26 = vmul.f32 1.442695, %v4043_v10  ;;  %v4049_v22 = vadd.f32 %v1914_v43, %v1796_v33  ;;  %v1798_v21 = vpop.f32.mrb[35].mxu0  ;;  %vm1944_vm6 = vcmp.gt.f32.partialorder %v4043_v10, 0.0 }
 0x276   : > { %2752 = vpow2.f32 %v1960_v1  ;;  %v1964_v6 = vmul.f32 1.442695, %v4046_v37  ;;  %v1885_v8 = vpop.f32.mrb[34].mxu1  ;;  %v4052_v61 = vadd.f32 %v1914_v43, %v1798_v21  ;;  %vm1945_vm8 = vcmp.gt.f32.partialorder %v4046_v37, 0.0 }
 0x277   : > { %2754 = vpow2.f32 %v1962_v26  ;;  %v1966_v23 = vmul.f32 1.442695, %v4049_v22  ;;  %v4055_v54 = vadd.f32 %v1914_v43, %v1885_v8  ;;  %v1887_v59 = vpop.f32.mrb[35].mxu1  ;;  %vm1946_vm9 = vcmp.gt.f32.partialorder %v4049_v22, 0.0 }
 0x278   : > { %2756 = vpow2.f32 %v1964_v6  ;;  %v1968_v56 = vmul.f32 1.442695, %v4052_v61  ;;  %v4058_v46 = vadd.f32 %v1914_v43, %v1887_v59  ;;  %v1802_v17 = vpop.f32.mrb[36].mxu0  ;;  %vm1947_vm10 = vcmp.gt.f32.partialorder %v4052_v61, 0.0 }
 0x279   : > { %2758 = vpow2.f32 %v1966_v23  ;;  %v1970_v62 = vmul.f32 1.442695, %v4055_v54  ;;  %v4061_v4 = vadd.f32 %v1919_v13, %v1802_v17  ;;  %v1804_v48 = vpop.f32.mrb[37].mxu0  ;;  %vm1948_vm11 = vcmp.gt.f32.partialorder %v4055_v54, 0.0 }
 0x27a   : > { %2760 = vpow2.f32 %v1968_v56  ;;  %v1972_v12 = vmul.f32 1.442695, %v4058_v46  ;;  %v1891_v50 = vpop.f32.mrb[36].mxu1  ;;  %v4064_v45 = vadd.f32 %v1919_v13, %v1804_v48  ;;  %vm1949_vm12 = vcmp.gt.f32.partialorder %v4058_v46, 0.0 }
 0x27b   : > { %2762 = vpow2.f32 %v1970_v62  ;;  %v1974_v42 = vmul.f32 1.442695, %v4061_v4  ;;  %v4067_v30 = vadd.f32 %v1919_v13, %v1891_v50  ;;  %v1893_v60 = vpop.f32.mrb[37].mxu1  ;;  %vm1950_vm13 = vcmp.gt.f32.partialorder %v4061_v4, 0.0 }
 0x27c   : > { %2764 = vpow2.f32 %v1972_v12  ;;  %v1976_v14 = vmul.f32 1.442695, %v4064_v45  ;;  %v1808_v35 = vpop.f32.mrb[38].mxu0  ;;  %v4073_v55 = vadd.f32 %v1919_v13, %v1893_v60  ;;  %vm1951_vm14 = vcmp.gt.f32.partialorder %v4064_v45, 0.0 }
 0x27d   : > { %2766 = vpow2.f32 %v1974_v42  ;;  %v1978_v20 = vmul.f32 1.442695, %v4067_v30  ;;  %v4076_v15 = vadd.f32 %v4069_v0, %v1808_v35  ;;  %v1810_v32 = vpop.f32.mrb[39].mxu0  ;;  %vm1952_vm15 = vcmp.gt.f32.partialorder %v4067_v30, 0.0 }
 0x27e   : > { %2768 = vpow2.f32 %v1976_v14  ;;  %v1897_v29 = vpop.f32.mrb[38].mxu1  ;;  %v4079_v57 = vadd.f32 %v4069_v0, %v1810_v32  ;;  %v1980_v63 = vmul.f32 1.442695, %v4073_v55  ;;  %vm1953_vm4 = vcmp.gt.f32.partialorder %v4073_v55, 0.0 }
 0x27f   : > { %v2751_v34 = vpop.eup %2750  ;;  %2770 = vpow2.f32 %v1978_v20  ;;  %v1982_v16 = vmul.f32 1.442695, %v4076_v15  ;;  %v4084_v47 = vadd.f32 %v4069_v0, %v1897_v29  ;;  %v4086_v19 = vpop.f32.mrb[39].mxu1  ;;  %vm1954_vm0 = vcmp.gt.f32.partialorder %v4076_v15, 0.0 }
 0x280   : > { %v2753_v40 = vpop.eup %2752  ;;  %v2456_v5 = vadd.f32 -1.0, %v2751_v34  ;;  %v1984_v7 = vmul.f32 1.442695, %v4079_v57  ;;  %vm1955_vm1 = vcmp.gt.f32.partialorder %v4079_v57, 0.0 }
 0x281   : > { %v2755_v2 = vpop.eup %2754  ;;  %v2457_v44 = vadd.f32 -1.0, %v2753_v40  ;;  %2772 = vpow2.f32 %v1982_v16  ;;  %v1986_v31 = vmul.f32 1.442695, %v4084_v47  ;;  %vm1956_vm2 = vcmp.gt.f32.partialorder %v4084_v47, 0.0 }
 0x282   : > { %v2757_v49 = vpop.eup %2756  ;;  %v2006_v53 = vmul.f32 1.6732632, %v2456_v5  ;;  %v2458_v41 = vadd.f32 -1.0, %v2755_v2  ;;  %2774 = vpow2.f32 %v1984_v7 }
 0x283   : > { %v2759_v24 = vpop.eup %2758  ;;  %v2007_v52 = vmul.f32 1.6732632, %v2457_v44  ;;  %v2459_v51 = vadd.f32 -1.0, %v2757_v49  ;;  %2776 = vpow2.f32 %v1986_v31 }
 0x284   : > { %v2761_v11 = vpop.eup %2760  ;;  %v2022_v28 = vsel %vm1942_vm5, %v4038_v58, %v2006_v53  ;;  %v2008_v25 = vmul.f32 1.6732632, %v2458_v41  ;;  %v2460_v38 = vadd.f32 -1.0, %v2759_v24  ;;  %2778 = vpow2.f32 %v1980_v63 }
 0x285   : > { %v2763_v9 = vpop.eup %2762  ;;  %v2461_v27 = vadd.f32 -1.0, %v2761_v11  ;;  %v2009_v39 = vmul.f32 1.6732632, %v2459_v51  ;;  %v2038_v33 = vmul.f32 1.050701, %v2022_v28  ;;  %v2023_v26 = vsel %vm1943_vm7, %v4040_v18, %v2007_v52 }
 0x286   : > { %v2765_v36 = vpop.eup %2764  ;;  %v2024_v3 = vsel %vm1944_vm6, %v4043_v10, %v2008_v25  ;;  %v2010_v43 = vmul.f32 1.6732632, %v2460_v38  ;;  %v2462_v1 = vadd.f32 -1.0, %v2763_v9 }
 0x287   : > { %v2767_v58 = vpop.eup %2766  ;;  %v2011_v21 = vmul.f32 1.6732632, %v2461_v27  ;;  %v2463_v6 = vadd.f32 -1.0, %v2765_v36  ;;  %v2040_v23 = vmul.f32 1.050701, %v2024_v3  ;;  %v2025_v12 = vsel %vm1945_vm8, %v4046_v37, %v2009_v39 }
 0x288   : > { %v2769_v8 = vpop.eup %2768  ;;  %v2026_v59 = vsel %vm1946_vm9, %v4049_v22, %v2010_v43  ;;  %v2012_v10 = vmul.f32 1.6732632, %v2462_v1  ;;  %v2464_v13 = vadd.f32 -1.0, %v2767_v58  ;;  %v1941_v37 = vadd.f32 %v4069_v0, %v4086_v19 }
 0x289   : > { %v2771_v56 = vpop.eup %2770  ;;  %v2042_v17 = vmul.f32 1.050701, %v2026_v59  ;;  %v2027_v62 = vsel %vm1947_vm10, %v4052_v61, %v2011_v21  ;;  %v2013_v48 = vmul.f32 1.6732632, %v2463_v6  ;;  %v2465_v18 = vadd.f32 -1.0, %v2769_v8  ;;  %v4300_v59 = vld [vmem:[#allocation6_spill] sm:$0xff] }
 0x28a   : > { %v2028_v22 = vsel %vm1948_vm11, %v4055_v54, %v2012_v10  ;;  %v2043_v50 = vmul.f32 1.050701, %v2027_v62  ;;  %v2466_v42 = vadd.f32 -1.0, %v2771_v56  ;;  %v2014_v61 = vmul.f32 1.6732632, %v2464_v13 }
 0x28b   : > { %v2773_v60 = vpop.eup %2772  ;;  %v2546_v14 = vpack.c.bf16 %v2042_v17, %v2038_v33  ;;  %v2044_v35 = vmul.f32 1.050701, %v2028_v22  ;;  %v2029_v20 = vsel %vm1949_vm12, %v4058_v46, %v2013_v48  ;;  %v2039_v54 = vmul.f32 1.050701, %v2023_v26 }
 0x28c   : > { %v2775_v32 = vpop.eup %2774  ;;  %v2045_v29 = vmul.f32 1.050701, %v2029_v20  ;;  %v2016_v34 = vmul.f32 1.6732632, %v2466_v42  ;;  %v2015_v5 = vmul.f32 1.6732632, %v2465_v18  ;;  %v2030_v63 = vsel %vm1950_vm13, %v4061_v4, %v2014_v61 }
 0x28d   : > { %v2777_v16 = vpop.eup %2776  ;;  %v2554_v40 = vpack.c.bf16 %v2044_v35, %v2040_v23  ;;  %v2468_v7 = vadd.f32 -1.0, %v2773_v60  ;;  %v2041_v2 = vmul.f32 1.050701, %v2025_v12  ;;  %v2469_v49 = vadd.f32 -1.0, %v2775_v32  ;;  %v2059_v23 = vpop.permute.xlu0 %2058 }
 0x28e   : > { %v2470_v44 = vadd.f32 -1.0, %v2777_v16  ;;  %v2779_v46 = vpop.eup %2778  ;;  %v2544_v53 = vpack.c.bf16 %v2043_v50, %v2039_v54  ;;  %v2032_v0 = vsel %vm1952_vm15, %v4067_v30, %v2016_v34  ;;  %v1988_v41 = vmul.f32 1.442695, %v1941_v37 }
 0x28f   : > { %v2018_v31 = vmul.f32 1.6732632, %v2468_v7  ;;  %v2552_v24 = vpack.c.bf16 %v2045_v29, %v2041_v2  ;;  %v2031_v52 = vsel %vm1951_vm14, %v4064_v45, %v2015_v5  ;;  %v2019_v11 = vmul.f32 1.6732632, %v2469_v49 }
 0x290   : > { %v2020_v19 = vmul.f32 1.6732632, %v2470_v44  ;;  %2545 = vmatprep.subr.bf16.mxu0 %v2544_v53  ;;  %v2046_v4 = vmul.f32 1.050701, %v2030_v63  ;;  %2780 = vpow2.f32 %v1988_v41  ;;  %v2048_v30 = vmul.f32 1.050701, %v2032_v0 }
 0x291   : > { %v2034_v51 = vsel %vm1954_vm0, %v4076_v15, %v2018_v31  ;;  %2553 = vmatprep.subr.bf16.mxu1 %v2552_v24  ;;  %2547 = vmatpush1.bf16.msra.mxu0 %v2546_v14  ;;  %v2035_v9 = vsel %vm1955_vm1, %v4079_v57, %v2019_v11  ;;  %v2047_v45 = vmul.f32 1.050701, %v2031_v52  ;;  %v2467_v39 = vadd.f32 -1.0, %v2779_v46 }
 0x292   : > { %v2050_v28 = vmul.f32 1.050701, %v2034_v51  ;;  %v2036_v25 = vsel %vm1956_vm2, %v4084_v47, %v2020_v19  ;;  %2555 = vmatpush1.bf16.msra.mxu1 %v2554_v40  ;;  %v2051_v27 = vmul.f32 1.050701, %v2035_v9  ;;  %v2054_v47 = vld [vmem:[%s4209_s9] sm:$0x1]  ;;  %v4302_v34 = vlaneseq }
 0x293   : > { %v2052_v38 = vmul.f32 1.050701, %v2036_v25  ;;  %v2017_v43 = vmul.f32 1.6732632, %v2467_v39  ;;  %vm1957_vm5 = vcmp.gt.f32.partialorder %v1941_v37, 0.0  ;;  %v4301_v10 = vsub.s32 0, %v4300_v59 }
 0x294   : > { %v2550_v15 = vpack.c.bf16 %v2050_v28, %v2046_v4  ;;  %v2548_v3 = vpack.c.bf16 %v2051_v27, %v2047_v45  ;;  %v2848_v18 = vmov 1966171168   ;;  %vm2242_vm6 = vcmp.lt.s32.totalorder %v4302_v34, 512 }
 0x295   : > { %v2558_v36 = vpack.c.bf16 %v2052_v38, %v2048_v30  ;;  %v2033_v57 = vsel %vm1953_vm4, %v4073_v55, %v2017_v43  ;;  %v2064_v13 = vrot.slane %v2059_v23, %v4301_v10  ;;  %v2218_v12 = vunpack.c.l.s4 %v2848_v18 }
 0x296   : > { %2549 = vmatprep.subr.bf16.mxu0 %v2548_v3  ;;  %v2049_v21 = vmul.f32 1.050701, %v2033_v57 }
 0x297   : > { %2551 = vmatpush1.bf16.msra.mxu0 %v2550_v15  ;;  %v2219_v22 = vunpack.c.0.s8 %v2218_v12 }
 0x299   : > { %v2222_v42 = vsub.s32 %v2219_v22, %v4300_v59 }
 0x29a   : > { %v2781_v1 = vpop.eup %2780  ;;  %2472 = vmatmul.mubr.msk.f32.vlgmr.msra.gmra.mrb[40].mxu0 %vm2065_vm3, %v2054_v47 }
 0x29b   : > { %v2471_v58 = vadd.f32 -1.0, %v2781_v1 }
 0x29d   : > { %v2021_v33 = vmul.f32 1.6732632, %v2471_v58 }
 0x29f   : > { %v2037_v26 = vsel %vm1957_vm5, %v1941_v37, %v2021_v33 }
 0x2a0   : > { %v2053_v6 = vmul.f32 1.050701, %v2037_v26 }
 0x2a2   : > { %v2556_v8 = vpack.c.bf16 %v2053_v6, %v2049_v21 }
 0x2a4   : > { %2557 = vmatprep.subr.bf16.mxu1 %v2556_v8 }
 0x2a5   : > { %2559 = vmatpush1.bf16.msra.mxu1 %v2558_v36 }
 0x2a8   : > { %2473 = vmatmul.mubr.msk.f32.vlgmr.msra.gmra.mrb[40].mxu1 %vm2065_vm3, %v2054_v47 }
 0x36d   : > { %v2135_v56 = vpop.f32.mrb[40].mxu0 }
 0x36e   : > { %v2136_v17 = vadd.f32 %v2135_v56, %v2064_v13  ;;  %v2137_v62 = vpop.f32.mrb[41].mxu0 }
 0x36f   : > { %v2138_v48 = vadd.f32 %v2137_v62, %v2064_v13 }
 0x371   : > { %v2215_v55 = vcombine.low %v2136_v17, %v2138_v48 }
 0x373   : > { %v2223_v20 = vrot.slane %v2215_v55, %v2222_v42 }
 0x37b   : > { %v2206_v50 = vpop.f32.mrb[40].mxu1 }
 0x37c   : > { %v2207_v60 = vadd.f32 %v2206_v50, %v2064_v13  ;;  %v2208_v14 = vpop.f32.mrb[41].mxu1 }
 0x37d   : > { %v2209_v35 = vadd.f32 %v2208_v14, %v2064_v13 }
 0x37f   : > { %v2216_v61 = vcombine.low %v2207_v60, %v2209_v35 }
 0x381   : > { %v2230_v32 = vrot.slane %v2216_v61, %v2222_v42 }
 0x383   : > { %v2231_v29 = vcombine.low %v2223_v20, %v2230_v32 }
 0x385   : > { %v2238_v37 = vrot.slane %v2231_v29, %v2222_v42 }
 0x387   : > { %2244 = vst.msk [vmem:[%s396_s12] sm:$0xf] %vm2242_vm6, %v2238_v37 }
 0x388   : > { %2795 = shalt.err (!%p2792_p3)
}
 0x389   : > { %s2796_s26 = scalar_lea.hbm %s4158_s17, 64  ;;  %s2800_s15 = scalar_lea.hbm %s4211_s11, 128 }
 0x38a   : > { %p2797_p4 = scmp.ne.s32.totalorder %s4158_s17, %s2796_s26  ;;  %p2801_p9 = scmp.lt.u32.totalorder %s4158_s17, %s4211_s11 }
 0x38b   : > { %p2802_p10 = scmp.lt.u32.totalorder %s2800_s15, %s2796_s26  ;;  %p2804_p12 = scmp.lt.u32.totalorder %s2796_s26, %s4158_s17 }
 0x38c   : > { %p2798_p7 = pnand %p2797_p4, %p2951_p5 }
 0x38d   : > { %p2803_p11 = por %p2802_p10, %p2801_p9 }
 0x38e   : > { %p2799_p8 = pneg %p2798_p7 }
 0x38f   : > { %p2805_p13 = por %p2804_p12, %p2803_p11 }
 0x391   : > { %p2806_p0 = pnand %p2805_p13, %p2799_p8 }
 0x393   : > { %2809 = shalt.err (!%p2806_p0)
}
 0x394   : > { %2576 = dma.vmem_to_hbm [thread:$0]  (%p2951_p5), %s4160_s14, 64, %s4158_s17, %s2246_s18  }
 0x395 PF: > { %p2582_p1 = scmp.ge.s32.totalorder %s2844_s22, 2  ;;  %s2272_s23 = sand.u32 1, %s2832_s19  }
 0x396   : > { %s2273_s25 = scalar_lea.sflag [#allocation4], %s2272_s23 }
 0x397   : > { %p2579_p2 = pnand %p2582_p1, %p2955_p6 }
 0x399   : > { %2827 = dma.done.wait (!%p2579_p2), %s2273_s25, 64  }
 0x39a   : > { %2829 = vsyncadd (!%p2579_p2), %s2273_s25, 4294967232  ;;  %p23_p3 = scmp.ge.s32.totalorder %s2938_s24, 4   ;;  %s4303_s19 = smov %s2836_s20 }
 0x39b   : > { %s4304_s20 = smov %s2840_s21  ;;  %s4305_s21 = smov %s2949_s27 }
 0x39c   : > { %s4306_s22 = smov %s2938_s24  ;;  %25 = sbr.rel (!%p23_p3) target bundleno = 6 (0x6), region = 102 }
 0x3a3   :  { %2278 = vsyncpa [#allocation4], 1 }
 0x3a4   :  { %2280 = vsyncpa [#allocation4 + $0x1], 1 }

</bundles_post_ra>
